<compile_context>
chip_gen: v7x
topology: tpu7x:2x2x1
jax: 0.10.0
libtpu: 0.0.40
codegen_flags: <defaults>
</compile_context>

<pallas_src>
import functools

import jax
import jax.numpy as jnp
from jax.experimental import pallas as pl
from jax.experimental.pallas import tpu as pltpu


def _round_up(n, m):
    return ((n + m - 1) // m) * m


# ---------------------------------------------------------------------------
# Kernel
# ---------------------------------------------------------------------------

def _vae_kernel(
    x_ref, eps_ref,
    w1_ref, b1_ref,          # img_2hid            (bf16 W, f32 b)
    wmulv_ref, bmulv_ref,    # hid_2mu || hid_2logvar (fused, each half z-padded)
    w2_ref, b2_ref,          # z_2hid
    w3_ref, b3_ref,          # hdim_2img
    xr_ref, mulv_ref,        # outputs: reconstruction, packed [mu || log_var]
    *, z_half,
):
    def mm(a_f32, w_ref):
        # bf16 x bf16 on the MXU, f32 accumulation.
        return jnp.dot(a_f32.astype(jnp.bfloat16), w_ref[...],
                       preferred_element_type=jnp.float32)

    x = x_ref[...]

    # encode: h = relu(x @ W1 + b1)
    h = jnp.maximum(mm(x, w1_ref) + b1_ref[...], 0.0)

    # fused latent projection: [mu || log_var] = h @ [Wmu || Wlv] + [bmu || blv]
    mulv = mm(h, wmulv_ref) + bmulv_ref[...]
    mu = mulv[:, :z_half]          # vreg-aligned split (z_half % 128 == 0)
    log_var = mulv[:, z_half:]

    # reparameterize: z = mu + eps * exp(0.5 * log_var)   (f32 elementwise)
    z = mu + eps_ref[...] * jnp.exp(0.5 * log_var)

    # decode: x_rec = sigmoid(relu(z @ W2 + b2) @ W3 + b3)
    hd = jnp.maximum(mm(z, w2_ref) + b2_ref[...], 0.0)
    logits = mm(hd, w3_ref) + b3_ref[...]

    xr_ref[...] = jax.nn.sigmoid(logits)
    mulv_ref[...] = mulv


# ---------------------------------------------------------------------------
# Wrapper
# ---------------------------------------------------------------------------

def vae_forward(x, eps, params, *, tb=256):
    """x: (B, input_dim) f32, eps: (B, z_dim) f32, params: packed kernel params.

    Returns (x_reconstructed, mu, log_var) with the original (unpadded) dims.
    """
    B, input_dim = x.shape
    z_dim = eps.shape[1]
    i_pad, h_pad = params["w1"].shape          # (input_dim padded, h_dim padded)
    z_half = params["wmulv"].shape[1] // 2     # per-latent padded width

    # Pad batch to a multiple of the batch tile; pad feature dims to the
    # lane-dense padded widths (zero padding, mathematically inert).
    Bp = pl.cdiv(B, tb) * tb
    x_p = jnp.pad(x, ((0, Bp - B), (0, i_pad - input_dim)))
    eps_p = jnp.pad(eps, ((0, Bp - B), (0, z_half - z_dim)))
    grid = (Bp // tb,)

    def row_spec(d):  # batch-tiled activation
        return pl.BlockSpec((tb, d), lambda i: (i, 0))

    def resident_spec(arr):  # weights/biases: same block every step -> VMEM-resident
        return pl.BlockSpec(arr.shape, lambda i: (0, 0))

    ordered_params = (
        params["w1"], params["b1"],
        params["wmulv"], params["bmulv"],
        params["w2"], params["b2"],
        params["w3"], params["b3"],
    )

    in_specs = [row_spec(i_pad), row_spec(z_half)] + [
        resident_spec(p) for p in ordered_params
    ]
    out_specs = [row_spec(i_pad), row_spec(2 * z_half)]
    out_shapes = (
        jax.ShapeDtypeStruct((Bp, i_pad), jnp.float32),       # x_reconstructed (padded)
        jax.ShapeDtypeStruct((Bp, 2 * z_half), jnp.float32),  # packed [mu || log_var]
    )

    # Advisory cost estimate so XLA schedules the call sensibly.
    flops = 2 * Bp * (i_pad * h_pad + h_pad * (2 * z_half)
                      + z_half * h_pad + h_pad * i_pad)
    transcendentals = Bp * (z_half + i_pad)     # exp for std, sigmoid per pixel
    param_bytes = sum(int(p.size) * p.dtype.itemsize for p in ordered_params)
    bytes_accessed = (int(x_p.size) * 4 + int(eps_p.size) * 4 + param_bytes
                      + Bp * i_pad * 4 + Bp * 2 * z_half * 4)
    cost = pl.CostEstimate(flops=flops, transcendentals=transcendentals,
                           bytes_accessed=bytes_accessed)

    xr, mulv = pl.pallas_call(
        functools.partial(_vae_kernel, z_half=z_half),
        out_shape=out_shapes,
        grid_spec=pltpu.PrefetchScalarGridSpec(
            num_scalar_prefetch=0,
            grid=grid,
            in_specs=in_specs,
            out_specs=out_specs,
        ),
        compiler_params=pltpu.CompilerParams(
            dimension_semantics=("parallel",),
            vmem_limit_bytes=16 << 20,
        ),
        cost_estimate=cost,
    )(x_p, eps_p, *ordered_params)

    x_rec = xr[:B, :input_dim]
    mu = mulv[:B, :z_dim]
    log_var = mulv[:B, z_half:z_half + z_dim]
    return x_rec, mu, log_var


# ---------------------------------------------------------------------------
# Parameter init (PyTorch-Linear-style) + packing for the kernel layout.
# ---------------------------------------------------------------------------

def init_raw_params(key, input_dim, h_dim=200, z_dim=20):
    """U(-1/sqrt(fan_in), +1/sqrt(fan_in)) like torch.nn.Linear.
    Weights stored pre-transposed as (in_features, out_features)."""
    def linear(k, fan_in, fan_out):
        kw, kb = jax.random.split(k)
        bound = 1.0 / (fan_in ** 0.5)
        w = jax.random.uniform(kw, (fan_in, fan_out), jnp.float32, -bound, bound)
        b = jax.random.uniform(kb, (1, fan_out), jnp.float32, -bound, bound)
        return w, b

    k1, k2, k3, k4, k5 = jax.random.split(key, 5)
    w1, b1 = linear(k1, input_dim, h_dim)    # img_2hid
    wmu, bmu = linear(k2, h_dim, z_dim)      # hid_2mu
    wlv, blv = linear(k3, h_dim, z_dim)      # hid_2logvar
    w2, b2 = linear(k4, z_dim, h_dim)        # z_2hid
    w3, b3 = linear(k5, h_dim, input_dim)    # hdim_2img
    return dict(w1=w1, b1=b1, wmu=wmu, bmu=bmu, wlv=wlv, blv=blv,
                w2=w2, b2=b2, w3=w3, b3=b3)


def pack_params(raw, input_dim, h_dim, z_dim):
    """Fuse mu/logvar weights, zero-pad every feature dim to a multiple of 128
    (input_dim, h_dim, and each latent half), cast weights to bf16 (biases
    stay f32).  Zero padding changes no results."""
    i_pad = _round_up(input_dim, 128)
    h_pad = _round_up(h_dim, 128)
    z_half = _round_up(z_dim, 128)

    def padw(w, rows, cols):
        return jnp.pad(w, ((0, rows - w.shape[0]), (0, cols - w.shape[1])))

    wmulv = jnp.concatenate(
        [padw(raw["wmu"], h_pad, z_half), padw(raw["wlv"], h_pad, z_half)], axis=1)
    bmulv = jnp.concatenate(
        [padw(raw["bmu"], 1, z_half), padw(raw["blv"], 1, z_half)], axis=1)

    return dict(
        w1=padw(raw["w1"], i_pad, h_pad).astype(jnp.bfloat16),
        b1=padw(raw["b1"], 1, h_pad),
        wmulv=wmulv.astype(jnp.bfloat16),
        bmulv=bmulv,
        w2=padw(raw["w2"], z_half, h_pad).astype(jnp.bfloat16),
        b2=padw(raw["b2"], 1, h_pad),
        w3=padw(raw["w3"], h_pad, i_pad).astype(jnp.bfloat16),
        b3=padw(raw["b3"], 1, i_pad),
    )


# ---------------------------------------------------------------------------
# References for correctness checking.
# ---------------------------------------------------------------------------

def vae_reference_f32(x, eps, p):
    """Full-f32, unfused reference matching the PyTorch forward pass."""
    h = jax.nn.relu(x @ p["w1"] + p["b1"])
    mu = h @ p["wmu"] + p["bmu"]
    log_var = h @ p["wlv"] + p["blv"]
    z = mu + eps * jnp.exp(0.5 * log_var)
    hd = jax.nn.relu(z @ p["w2"] + p["b2"])
    xr = jax.nn.sigmoid(hd @ p["w3"] + p["b3"])
    return xr, mu, log_var


def vae_reference_bf16(x, eps, kp, input_dim, z_dim):
    """Reference using the same bf16-weight / f32-accumulate / padded model
    as the kernel."""
    i_pad = kp["w1"].shape[0]
    z_half = kp["wmulv"].shape[1] // 2
    xp = jnp.pad(x, ((0, 0), (0, i_pad - input_dim)))
    ep = jnp.pad(eps, ((0, 0), (0, z_half - z_dim)))

    def mm(a, w):
        return jnp.dot(a.astype(jnp.bfloat16), w, preferred_element_type=jnp.float32)

    h = jax.nn.relu(mm(xp, kp["w1"]) + kp["b1"])
    mulv = mm(h, kp["wmulv"]) + kp["bmulv"]
    mu, lv = mulv[:, :z_half], mulv[:, z_half:]
    z = mu + ep * jnp.exp(0.5 * lv)
    hd = jax.nn.relu(mm(z, kp["w2"]) + kp["b2"])
    xr = jax.nn.sigmoid(mm(hd, kp["w3"]) + kp["b3"])
    return xr[:, :input_dim], mu[:, :z_dim], lv[:, :z_dim]


if __name__ == "__main__":
    # MNIST-style input with the module's default hidden / latent sizes,
    # small batch, and a small batch tile so the grid is exercised (grid=2).
    B, INPUT_DIM, H_DIM, Z_DIM, TB = 32, 784, 200, 20, 16

    key = jax.random.PRNGKey(0)
    kx, keps, kparams = jax.random.split(key, 3)

    x = jax.random.uniform(kx, (B, INPUT_DIM), jnp.float32)      # "image" batch
    eps = jax.random.normal(keps, (B, Z_DIM), jnp.float32)       # reparam noise
    raw_params = init_raw_params(kparams, INPUT_DIM, H_DIM, Z_DIM)
    packed_params = pack_params(raw_params, INPUT_DIM, H_DIM, Z_DIM)

    fwd = jax.jit(functools.partial(vae_forward, tb=TB))
    x_rec, mu, log_var = jax.block_until_ready(fwd(x, eps, packed_params))

    assert x_rec.shape == (B, INPUT_DIM)
    assert mu.shape == (B, Z_DIM) and log_var.shape == (B, Z_DIM)

    # Exact-model reference (same bf16 matmul precision): tight check.
    xr_b, mu_b, lv_b = vae_reference_bf16(x, eps, packed_params, INPUT_DIM, Z_DIM)
    assert jnp.allclose(x_rec, xr_b, atol=2e-3, rtol=2e-3)
    assert jnp.allclose(mu, mu_b, atol=2e-3, rtol=2e-3)
    assert jnp.allclose(log_var, lv_b, atol=2e-3, rtol=2e-3)

    # Original f32 PyTorch-semantics reference: loose check (bf16 weights).
    xr_f, mu_f, lv_f = vae_reference_f32(x, eps, raw_params)
    assert jnp.allclose(x_rec, xr_f, atol=3e-2, rtol=3e-2)
    assert jnp.allclose(mu, mu_f, atol=3e-2, rtol=3e-2)
    assert jnp.allclose(log_var, lv_f, atol=3e-2, rtol=3e-2)

    print("KERNEL_OK")
</pallas_src>

<mosaic_0001>
module attributes {stable_mosaic.version = 11 : i64} {
  func.func @_vae_kernel(%arg0: i32, %arg1: memref<16x896xf32, #tpu.memory_space<vmem>>, %arg2: memref<16x128xf32, #tpu.memory_space<vmem>>, %arg3: memref<896x256xbf16, #tpu.memory_space<vmem>>, %arg4: memref<1x256xf32, #tpu.memory_space<vmem>>, %arg5: memref<256x256xbf16, #tpu.memory_space<vmem>>, %arg6: memref<1x256xf32, #tpu.memory_space<vmem>>, %arg7: memref<128x256xbf16, #tpu.memory_space<vmem>>, %arg8: memref<1x256xf32, #tpu.memory_space<vmem>>, %arg9: memref<256x896xbf16, #tpu.memory_space<vmem>>, %arg10: memref<1x896xf32, #tpu.memory_space<vmem>>, %arg11: memref<16x896xf32, #tpu.memory_space<vmem>>, %arg12: memref<16x256xf32, #tpu.memory_space<vmem>>) attributes {dimension_semantics = [#tpu.dimension_semantics<parallel>], iteration_bounds = array<i64: 2>, scalar_prefetch = 0 : i64, scratch_operands = 0 : i64, tpu.core_type = #tpu.core_type<tc>, window_params = [{transform_indices = @transform_0, window_bounds = array<i64: 16, 896>}, {transform_indices = @transform_1, window_bounds = array<i64: 16, 128>}, {pipeline_mode = #tpu.pipeline_mode<synchronous>, transform_indices = @transform_2, window_bounds = array<i64: 896, 256>}, {pipeline_mode = #tpu.pipeline_mode<synchronous>, transform_indices = @transform_3, window_bounds = array<i64: 1, 256>}, {pipeline_mode = #tpu.pipeline_mode<synchronous>, transform_indices = @transform_4, window_bounds = array<i64: 256, 256>}, {pipeline_mode = #tpu.pipeline_mode<synchronous>, transform_indices = @transform_5, window_bounds = array<i64: 1, 256>}, {pipeline_mode = #tpu.pipeline_mode<synchronous>, transform_indices = @transform_6, window_bounds = array<i64: 128, 256>}, {pipeline_mode = #tpu.pipeline_mode<synchronous>, transform_indices = @transform_7, window_bounds = array<i64: 1, 256>}, {pipeline_mode = #tpu.pipeline_mode<synchronous>, transform_indices = @transform_8, window_bounds = array<i64: 256, 896>}, {pipeline_mode = #tpu.pipeline_mode<synchronous>, transform_indices = @transform_9, window_bounds = array<i64: 1, 896>}, {transform_indices = @transform_10, window_bounds = array<i64: 16, 896>}, {transform_indices = @transform_11, window_bounds = array<i64: 16, 256>}]} {
    %c0 = arith.constant 0 : index
    %c0_0 = arith.constant 0 : index
    %0 = vector.load %arg1[%c0, %c0_0] : memref<16x896xf32, #tpu.memory_space<vmem>>, vector<16x896xf32>
    %1 = arith.truncf %0 : vector<16x896xf32> to vector<16x896xbf16>
    %c0_1 = arith.constant 0 : index
    %c0_2 = arith.constant 0 : index
    %2 = vector.load %arg3[%c0_1, %c0_2] : memref<896x256xbf16, #tpu.memory_space<vmem>>, vector<896x256xbf16>
    %cst = arith.constant dense<0.000000e+00> : vector<16x256xf32>
    %3 = tpu.matmul %1, %2, %cst {dimension_numbers = #tpu.dot_dimension_numbers<[1], [0], [0], [1], [0, 0, 1, 1], [], []>} : vector<16x896xbf16>, vector<896x256xbf16>, vector<16x256xf32> -> vector<16x256xf32>
    %c0_3 = arith.constant 0 : index
    %c0_4 = arith.constant 0 : index
    %4 = vector.load %arg4[%c0_3, %c0_4] : memref<1x256xf32, #tpu.memory_space<vmem>>, vector<1x256xf32>
    %5 = vector.broadcast %4 : vector<1x256xf32> to vector<16x256xf32>
    %6 = arith.addf %3, %5 : vector<16x256xf32>
    %cst_5 = arith.constant 0.000000e+00 : f32
    %7 = vector.broadcast %cst_5 : f32 to vector<16x256xf32>
    %8 = arith.maximumf %6, %7 : vector<16x256xf32>
    %9 = arith.truncf %8 : vector<16x256xf32> to vector<16x256xbf16>
    %c0_6 = arith.constant 0 : index
    %c0_7 = arith.constant 0 : index
    %10 = vector.load %arg5[%c0_6, %c0_7] : memref<256x256xbf16, #tpu.memory_space<vmem>>, vector<256x256xbf16>
    %cst_8 = arith.constant dense<0.000000e+00> : vector<16x256xf32>
    %11 = tpu.matmul %9, %10, %cst_8 {dimension_numbers = #tpu.dot_dimension_numbers<[1], [0], [0], [1], [0, 0, 1, 1], [], []>} : vector<16x256xbf16>, vector<256x256xbf16>, vector<16x256xf32> -> vector<16x256xf32>
    %c0_9 = arith.constant 0 : index
    %c0_10 = arith.constant 0 : index
    %12 = vector.load %arg6[%c0_9, %c0_10] : memref<1x256xf32, #tpu.memory_space<vmem>>, vector<1x256xf32>
    %13 = vector.broadcast %12 : vector<1x256xf32> to vector<16x256xf32>
    %14 = arith.addf %11, %13 : vector<16x256xf32>
    %15 = vector.extract_strided_slice %14 {offsets = [0, 0], sizes = [16, 128], strides = [1, 1]} : vector<16x256xf32> to vector<16x128xf32>
    %16 = vector.extract_strided_slice %14 {offsets = [0, 128], sizes = [16, 128], strides = [1, 1]} : vector<16x256xf32> to vector<16x128xf32>
    %c0_11 = arith.constant 0 : index
    %c0_12 = arith.constant 0 : index
    %17 = vector.load %arg2[%c0_11, %c0_12] : memref<16x128xf32, #tpu.memory_space<vmem>>, vector<16x128xf32>
    %cst_13 = arith.constant 5.000000e-01 : f32
    %18 = vector.broadcast %cst_13 : f32 to vector<16x128xf32>
    %19 = arith.mulf %18, %16 : vector<16x128xf32>
    %20 = math.exp %19 : vector<16x128xf32>
    %21 = arith.mulf %17, %20 : vector<16x128xf32>
    %22 = arith.addf %15, %21 : vector<16x128xf32>
    %23 = arith.truncf %22 : vector<16x128xf32> to vector<16x128xbf16>
    %c0_14 = arith.constant 0 : index
    %c0_15 = arith.constant 0 : index
    %24 = vector.load %arg7[%c0_14, %c0_15] : memref<128x256xbf16, #tpu.memory_space<vmem>>, vector<128x256xbf16>
    %cst_16 = arith.constant dense<0.000000e+00> : vector<16x256xf32>
    %25 = tpu.matmul %23, %24, %cst_16 {dimension_numbers = #tpu.dot_dimension_numbers<[1], [0], [0], [1], [0, 0, 1, 1], [], []>} : vector<16x128xbf16>, vector<128x256xbf16>, vector<16x256xf32> -> vector<16x256xf32>
    %c0_17 = arith.constant 0 : index
    %c0_18 = arith.constant 0 : index
    %26 = vector.load %arg8[%c0_17, %c0_18] : memref<1x256xf32, #tpu.memory_space<vmem>>, vector<1x256xf32>
    %27 = vector.broadcast %26 : vector<1x256xf32> to vector<16x256xf32>
    %28 = arith.addf %25, %27 : vector<16x256xf32>
    %cst_19 = arith.constant 0.000000e+00 : f32
    %29 = vector.broadcast %cst_19 : f32 to vector<16x256xf32>
    %30 = arith.maximumf %28, %29 : vector<16x256xf32>
    %31 = arith.truncf %30 : vector<16x256xf32> to vector<16x256xbf16>
    %c0_20 = arith.constant 0 : index
    %c0_21 = arith.constant 0 : index
    %32 = vector.load %arg9[%c0_20, %c0_21] : memref<256x896xbf16, #tpu.memory_space<vmem>>, vector<256x896xbf16>
    %cst_22 = arith.constant dense<0.000000e+00> : vector<16x896xf32>
    %33 = tpu.matmul %31, %32, %cst_22 {dimension_numbers = #tpu.dot_dimension_numbers<[1], [0], [0], [1], [0, 0, 1, 1], [], []>} : vector<16x256xbf16>, vector<256x896xbf16>, vector<16x896xf32> -> vector<16x896xf32>
    %c0_23 = arith.constant 0 : index
    %c0_24 = arith.constant 0 : index
    %34 = vector.load %arg10[%c0_23, %c0_24] : memref<1x896xf32, #tpu.memory_space<vmem>>, vector<1x896xf32>
    %35 = vector.broadcast %34 : vector<1x896xf32> to vector<16x896xf32>
    %36 = arith.addf %33, %35 : vector<16x896xf32>
    %37 = arith.negf %36 : vector<16x896xf32>
    %38 = math.exp %37 : vector<16x896xf32>
    %cst_25 = arith.constant 1.000000e+00 : f32
    %39 = vector.broadcast %cst_25 : f32 to vector<16x896xf32>
    %40 = arith.addf %39, %38 : vector<16x896xf32>
    %41 = arith.divf %39, %40 : vector<16x896xf32>
    %c0_26 = arith.constant 0 : index
    %c0_27 = arith.constant 0 : index
    %42 = vector.load %arg11[%c0_26, %c0_27] : memref<16x896xf32, #tpu.memory_space<vmem>>, vector<16x896xf32>
    tpu.vector_store %arg11[%c0_26, %c0_27], %41 {strides = array<i32>} : memref<16x896xf32, #tpu.memory_space<vmem>>, vector<16x896xf32>,
    %c0_28 = arith.constant 0 : index
    %c0_29 = arith.constant 0 : index
    %43 = vector.load %arg12[%c0_28, %c0_29] : memref<16x256xf32, #tpu.memory_space<vmem>>, vector<16x256xf32>
    tpu.vector_store %arg12[%c0_28, %c0_29], %14 {strides = array<i32>} : memref<16x256xf32, #tpu.memory_space<vmem>>, vector<16x256xf32>,
    return
  }
  func.func @transform_0(%arg0: i32) -> (i32, i32) {
    %c0_i32 = arith.constant 0 : i32
    %c0_i32_0 = arith.constant 0 : i32
    return %arg0, %c0_i32 : i32, i32
  }
  func.func @transform_1(%arg0: i32) -> (i32, i32) {
    %c0_i32 = arith.constant 0 : i32
    %c0_i32_0 = arith.constant 0 : i32
    return %arg0, %c0_i32 : i32, i32
  }
  func.func @transform_2(%arg0: i32) -> (i32, i32) {
    %c0_i32 = arith.constant 0 : i32
    %c0_i32_0 = arith.constant 0 : i32
    %c0_i32_1 = arith.constant 0 : i32
    return %c0_i32, %c0_i32_0 : i32, i32
  }
  func.func @transform_3(%arg0: i32) -> (i32, i32) {
    %c0_i32 = arith.constant 0 : i32
    %c0_i32_0 = arith.constant 0 : i32
    %c0_i32_1 = arith.constant 0 : i32
    return %c0_i32, %c0_i32_0 : i32, i32
  }
  func.func @transform_4(%arg0: i32) -> (i32, i32) {
    %c0_i32 = arith.constant 0 : i32
    %c0_i32_0 = arith.constant 0 : i32
    %c0_i32_1 = arith.constant 0 : i32
    return %c0_i32, %c0_i32_0 : i32, i32
  }
  func.func @transform_5(%arg0: i32) -> (i32, i32) {
    %c0_i32 = arith.constant 0 : i32
    %c0_i32_0 = arith.constant 0 : i32
    %c0_i32_1 = arith.constant 0 : i32
    return %c0_i32, %c0_i32_0 : i32, i32
  }
  func.func @transform_6(%arg0: i32) -> (i32, i32) {
    %c0_i32 = arith.constant 0 : i32
    %c0_i32_0 = arith.constant 0 : i32
    %c0_i32_1 = arith.constant 0 : i32
    return %c0_i32, %c0_i32_0 : i32, i32
  }
  func.func @transform_7(%arg0: i32) -> (i32, i32) {
    %c0_i32 = arith.constant 0 : i32
    %c0_i32_0 = arith.constant 0 : i32
    %c0_i32_1 = arith.constant 0 : i32
    return %c0_i32, %c0_i32_0 : i32, i32
  }
  func.func @transform_8(%arg0: i32) -> (i32, i32) {
    %c0_i32 = arith.constant 0 : i32
    %c0_i32_0 = arith.constant 0 : i32
    %c0_i32_1 = arith.constant 0 : i32
    return %c0_i32, %c0_i32_0 : i32, i32
  }
  func.func @transform_9(%arg0: i32) -> (i32, i32) {
    %c0_i32 = arith.constant 0 : i32
    %c0_i32_0 = arith.constant 0 : i32
    %c0_i32_1 = arith.constant 0 : i32
    return %c0_i32, %c0_i32_0 : i32, i32
  }
  func.func @transform_10(%arg0: i32) -> (i32, i32) {
    %c0_i32 = arith.constant 0 : i32
    %c0_i32_0 = arith.constant 0 : i32
    return %arg0, %c0_i32 : i32, i32
  }
  func.func @transform_11(%arg0: i32) -> (i32, i32) {
    %c0_i32 = arith.constant 0 : i32
    %c0_i32_0 = arith.constant 0 : i32
    return %arg0, %c0_i32 : i32, i32
  }
}

</mosaic_0001>

<bundles_post_ra>
// kernel: vae_forward.1
= control target key start
LH: loop header
LB: loop body
LE: loop exit
PB: predicated region body
PF: predicated region fallthrough
CT: control target
= control target key end

     0   :  { %17 = vsyncpa [#allocation3], 0  ;;  %s4415_s0 = inlined_call_operand.vmem [shape: f32[32,896], index: 0, kind: input, shape index: {}]   ;;  %s4416_s1 = inlined_call_operand.vmem [shape: f32[32,128], index: 1, kind: input, shape index: {}]   ;;  %s4417_s2 = inlined_call_operand.hbm [shape: bf16[896,256], index: 2, kind: input, shape index: {}]   ;;  %s4418_s3 = inlined_call_operand.vmem [shape: f32[1,256], index: 3, kind: input, shape index: {}]   ;;  %s4419_s4 = inlined_call_operand.vmem [shape: bf16[256,256], index: 4, kind: input, shape index: {}]   ;;  %s4420_s5 = inlined_call_operand.vmem [shape: f32[1,256], index: 5, kind: input, shape index: {}]   ;;  %s4421_s6 = inlined_call_operand.vmem [shape: bf16[128,256], index: 6, kind: input, shape index: {}]   ;;  %s4422_s7 = inlined_call_operand.vmem [shape: f32[1,256], index: 7, kind: input, shape index: {}]   ;;  %s4423_s8 = inlined_call_operand.hbm [shape: bf16[256,896], index: 8, kind: input, shape index: {}]   ;;  %s4424_s9 = inlined_call_operand.vmem [shape: f32[1,896], index: 9, kind: input, shape index: {}]   ;;  %s4425_s10 = inlined_call_operand.hbm [shape: f32[32,896], index: 10, kind: output, shape index: {0}]   ;;  %s4426_s11 = inlined_call_operand.vmem [shape: f32[32,256], index: 11, kind: output, shape index: {1}]  }
   0x1   :  { %18 = vsyncpa [#allocation6], 0 }
   0x2   :  { %19 = vsyncpa [#allocation4], 0 }
   0x3   :  { %21 = vsyncpa [#allocation4 + $0x1], 0  ;;  %s3993_s17 = smov 0   ;;  %s3995_s18 = smov 0  }
   0x4   :  { %s3997_s19 = smov 0   ;;  %s3999_s20 = smov 0  }
   0x5 LB: > { %4435 = sst [smem:[#allocation11_spill]] %s3909_s17  ;;  %s4014_s21 = sadd.s32 4294967295, %s3921_s20   ;;  %s3921_s20 = sphi %s3999_s20, %s4453_s20   ;;  %s3917_s19 = sphi %s3997_s19, %s4455_s19   ;;  %s3913_s18 = sphi %s3995_s18, %s4457_s18   ;;  %s3909_s17 = sphi %s3993_s17, %s4456_s17  }
   0x6   : > { %4436 = sst [smem:[#allocation12_spill]] %s3917_s19  ;;  %s2920_s22 = sadd.s32 4294967294, %s3921_s20  }
   0x7   : > { %s4018_s23 = sadd.s32 1, %s3921_s20   ;;  %s254_s24 = sadd.s32 1, %s3917_s19 }
   0x8   : > { %4437 = sst [smem:[#allocation13_spill]] %s4018_s23  ;;  %s251_s25 = ssub.s32 %s3921_s20, %s4018_s23 }
   0x9   : > { %p264_p0 = scmp.ne.s32.totalorder %s3917_s19, %s3913_s18  ;;  %p252_p1 = scmp.eq.s32.totalorder %s251_s25, 0 }
   0xa   : > { %p265_p2 = scmp.eq.s32.totalorder %s4014_s21, 1  ;;  %p270_p3 = scmp.ne.s32.totalorder %s3913_s18, %s3909_s17 }
   0xb   : > { %p271_p4 = scmp.eq.s32.totalorder %s2920_s22, 1  ;;  %p2921_p7 = scmp.ge.s32.totalorder %s3921_s20, 1 }
   0xc   : > { %s4029_s26 = scalar_select %p252_p1, %s3917_s19, %s254_s24  }
   0xd   : > { %p4031_p5 = por %p265_p2, %p264_p0  ;;  %p4035_p6 = por %p271_p4, %p270_p3 }
   0xe   : > { %4438 = sst [smem:[#allocation14_spill]] %s4029_s26  ;;  %p304_p8 = scmp.lt.s32.totalorder %s3921_s20, 3 }
   0xf   : > { %s4439_s27 = scalar_select %p4031_p5, 1, 0 }
  0x10   : > { %s4440_s28 = scalar_select %p4035_p6, 1, 0 }
  0x11   : > { %p4428_p9 = scmp.eq.s32.totalorder %s4014_s21, 0  ;;  %p4042_p10 = pnand %p2921_p7, %p304_p8 }
  0x12   : > { %4441 = sst [smem:[#allocation15_spill]] %s4440_s28  ;;  %s3923_s30 = smov [#allocation2]  }
  0x13   : > { %s4442_s29 = scalar_select %p4042_p10, 1, 0 }
  0x14   : > { %s316_s12 = sshll.u32 %s3923_s30, 4  ;;  %p3278_p11 = pneg %p4042_p10  ;;  %s317_s12 = int_to_ptr.vmem [resolvable:$true] %s316_s12 }
  0x15   : > { %s3924_s14 = smov [#allocation5]   ;;  %s3795_s24 = scalar_lea.hbm %s4417_s2, 14336 }
  0x16   : > { %p4050_p12 = pnand %p4428_p9, %p3278_p11  ;;  %s344_s15 = sshll.u32 %s3924_s14, 4  ;;  %s4054_s15 = int_to_ptr.vmem [resolvable:$true] %s344_s15 }
  0x17   : > { %p3796_p13 = scmp.ne.s32.totalorder %s4417_s2, %s3795_s24  ;;  %p3802_p3 = scmp.lt.u32.totalorder %s3795_s24, %s4417_s2 }
  0x18   : > { %p3797_p0 = pneg %p4050_p12 }
  0x1a   : > { %p3798_p1 = pnand %p3797_p0, %p3796_p13 }
  0x1c   : > { %p3799_p2 = pneg %p3798_p1 }
  0x1e   : > { %p3804_p4 = pnand %p3802_p3, %p3799_p2 }
  0x20   : > { %3807 = shalt.err (!%p3804_p4)
}
  0x21   : > { %s3808_s14 = scalar_lea.vmem %s317_s12, 14336  ;;  %p3816_p9 = scmp.lt.s32.totalorder %s317_s12, %s317_s12 }
  0x22   : > { %p3809_p7 = scmp.ne.s32.totalorder %s317_s12, %s3808_s14  ;;  %p3817_p6 = scmp.lt.s32.totalorder %s3808_s14, %s3808_s14 }
  0x24   : > { %p3811_p8 = pnand %p3809_p7, %p3797_p0  ;;  %p3818_p5 = por %p3817_p6, %p3816_p9 }
  0x26   : > { %p3812_p11 = pneg %p3811_p8 }
  0x28   : > { %p3819_p10 = pnand %p3818_p5, %p3812_p11 }
  0x2a   : > { %3822 = shalt.err (!%p3819_p10)
}
  0x2b   : > { %s3925_s16 = smov 128   ;;  %s3926_s22 = smov 8  }
  0x2c   : > { %3281 = dma.hbm_to_vmem [thread:$0]  (!%p4050_p12), %s4417_s2, 14336, %s317_s12, [#allocation3], %s3925_s16, %s3925_s16, %s3926_s22  }
  0x2d   : > { %s3823_s30 = scalar_lea.hbm %s4423_s8, 14336 }
  0x2e   : > { %p3824_p13 = scmp.ne.s32.totalorder %s4423_s8, %s3823_s30  ;;  %p3830_p9 = scmp.lt.u32.totalorder %s3823_s30, %s4423_s8 }
  0x30   : > { %p3826_p5 = pnand %p3824_p13, %p3797_p0 }
  0x32   : > { %p3827_p6 = pneg %p3826_p5 }
  0x34   : > { %p3832_p10 = pnand %p3830_p9, %p3827_p6 }
  0x36   : > { %3835 = shalt.err (!%p3832_p10)
}
  0x37   : > { %s3836_s12 = scalar_lea.vmem %s4054_s15, 14336  ;;  %p3844_p4 = scmp.lt.s32.totalorder %s4054_s15, %s4054_s15 }
  0x38   : > { %p3837_p1 = scmp.ne.s32.totalorder %s4054_s15, %s3836_s12  ;;  %p3845_p7 = scmp.lt.s32.totalorder %s3836_s12, %s3836_s12 }
  0x3a   : > { %p3839_p2 = pnand %p3837_p1, %p3797_p0  ;;  %p3846_p8 = por %p3845_p7, %p3844_p4 }
  0x3c   : > { %p3840_p3 = pneg %p3839_p2 }
  0x3e   : > { %p3847_p11 = pnand %p3846_p8, %p3840_p3 }
  0x40   : > { %3850 = shalt.err (!%p3847_p11)
}
  0x41   : > { %s3927_s17 = smov 448   ;;  %s3928_s23 = smov 28  }
  0x42   : > { %3284 = dma.hbm_to_vmem [thread:$0]  (!%p4050_p12), %s4423_s8, 14336, %s4054_s15, [#allocation6], %s3927_s17, %s3927_s17, %s3928_s23  }
  0x43   : > { %p4444_p13 = scmp.ne.s32.totalorder %s4442_s29, 0 }
  0x44   : > { %p4445_p0 = scmp.eq.s32.totalorder (!%p4444_p13), %s4014_s21, 0 }
  0x45   : > { %382 = sbr.rel (%p4444_p13) target bundleno = 1343 (0x53f), region = 60 }
  0x4c   : > { %3896 = dma.done.wait (%p4445_p0), [#allocation3], 14336   ;;  %p4446_p5 = pmov %p4445_p0 }
  0x4d   : > { %p4447_p6 = pmov %p4445_p0 }
  0x4e   : > { %3898 = vsyncadd (%p4446_p5), [#allocation3], 4294952960 }
  0x4f   : > { %3900 = dma.done.wait (%p4447_p6), [#allocation6], 14336   ;;  %p4448_p9 = pmov %p4445_p0 }
  0x50   : > { %v3335_v0 = vld [vmem:[#allocation2 + $0x4] ss:$8 sps:$4 sm:$0xff]   ;;  %v3337_v1 = vld [vmem:[#allocation2] ss:$8 sps:$4 sm:$0xff]   ;;  %v3338_v2 = vld [vmem:[#allocation2 + $0x14] ss:$8 sps:$4 sm:$0xff]  }
  0x51   : > { %3902 = vsyncadd (%p4448_p9), [#allocation6], 4294952960  ;;  %1165 = vmatprep.subr.bf16.mxu0 %v3335_v0  ;;  %v3340_v3 = vld [vmem:[#allocation2 + $0x10] ss:$8 sps:$4 sm:$0xff]   ;;  %s2928_s29 = sshll.u32 %s4014_s21, 1  ;;  %s427_s30 = sand.u32 1, %s3913_s18  }
  0x52   : > { %1166 = vmatpush1.bf16.msra.mxu0 %v3337_v1  ;;  %v3341_v4 = vld [vmem:[#allocation2 + $0x24] ss:$8 sps:$4 sm:$0xff]   ;;  %p439_p12 = scmp.lt.s32.totalorder %s2928_s29, 3  ;;  %v3343_v5 = vld [vmem:[#allocation2 + $0x20] ss:$8 sps:$4 sm:$0xff]   ;;  %s3265_s14 = smul.u32 112, %s427_s30 }
  0x53   : > { %1167 = vmatprep.subr.bf16.mxu0 %v3338_v2  ;;  %v3344_v6 = vld [vmem:[#allocation2 + $0x34] ss:$8 sps:$4 sm:$0xff]   ;;  %v3346_v7 = vld [vmem:[#allocation2 + $0x30] ss:$8 sps:$4 sm:$0xff]   ;;  %v3347_v8 = vld [vmem:[#allocation2 + $0x44] ss:$8 sps:$4 sm:$0xff]  }
  0x54   : > { %s4459_s29 = smov (!%p439_p12, %s2928_s29), 3  ;;  %v3349_v9 = vld [vmem:[#allocation2 + $0x40] ss:$8 sps:$4 sm:$0xff]   ;;  %v3350_v10 = vld [vmem:[#allocation2 + $0x54] ss:$8 sps:$4 sm:$0xff]   ;;  %s4341_s12 = scalar_lea.vmem [#allocation7], %s3265_s14 }
  0x55   : > { %s3266_s13 = smul.u32 56, %s4459_s29  ;;  %v3352_v11 = vld [vmem:[#allocation2 + $0x50] ss:$8 sps:$4 sm:$0xff]   ;;  %v3353_v12 = vld [vmem:[#allocation2 + $0x64] ss:$8 sps:$4 sm:$0xff]   ;;  %s3226_s17 = sshll.u32 %s4459_s29, 4 }
  0x56   : > { %1168 = vmatpush1.bf16.msra.mxu0 %v3340_v3  ;;  %v3355_v16 = vld [vmem:[#allocation2 + $0x60] ss:$8 sps:$4 sm:$0xff]   ;;  %v3356_v17 = vld [vmem:[#allocation2 + $0x74] ss:$8 sps:$4 sm:$0xff]   ;;  %v3358_v18 = vld [vmem:[#allocation2 + $0x70] ss:$8 sps:$4 sm:$0xff]   ;;  %s457_s28 = scalar_lea.vmem %s4426_s11, %s3226_s17 }
  0x57   : > { %1169 = vmatprep.subr.bf16.mxu0 %v3341_v4  ;;  %s4120_s19 = scalar_lea.vmem %s4415_s0, %s3266_s13  ;;  %v3359_v19 = vld [vmem:[#allocation2 + $0x84] ss:$8 sps:$4 sm:$0xff]   ;;  %v3361_v20 = vld [vmem:[#allocation2 + $0x80] ss:$8 sps:$4 sm:$0xff]   ;;  %v3362_v21 = vld [vmem:[#allocation2 + $0x94] ss:$8 sps:$4 sm:$0xff]  }
  0x58   : > { %v461_v13 = vld [vmem:[%s4120_s19 + $0x8] sm:$0xff]  ;;  %v468_v14 = vld [vmem:[%s4120_s19 + $0x40] sm:$0xff]  ;;  %v3364_v22 = vld [vmem:[#allocation2 + $0x90] ss:$8 sps:$4 sm:$0xff]   ;;  %s2931_s16 = sshll.u32 %s4459_s29, 3  ;;  %s3267_s17 = smul.u32 1792, %s4014_s21 }
  0x59   : > { %v475_v15 = vpack.c.bf16 %v468_v14, %v461_v13  ;;  %v3365_v23 = vld [vmem:[#allocation2 + $0xa4] ss:$8 sps:$4 sm:$0xff]   ;;  %v3367_v24 = vld [vmem:[#allocation2 + $0xa0] ss:$8 sps:$4 sm:$0xff]   ;;  %v3368_v25 = vld [vmem:[#allocation2 + $0xb4] ss:$8 sps:$4 sm:$0xff]   ;;  %s449_s22 = scalar_lea.vmem %s4416_s1, %s2931_s16 }
  0x5a   : > { %1170 = vmatpush1.bf16.msra.mxu0 %v3343_v5  ;;  %v3370_v26 = vld [vmem:[#allocation2 + $0xb0] ss:$8 sps:$4 sm:$0xff]   ;;  %v3371_v27 = vld [vmem:[#allocation2 + $0xc4] ss:$8 sps:$4 sm:$0xff]   ;;  %v3373_v28 = vld [vmem:[#allocation2 + $0xc0] ss:$8 sps:$4 sm:$0xff]   ;;  %s4366_s16 = scalar_lea.hbm %s4425_s10, %s3267_s17 }
  0x5b   : > { %1171 = vmatprep.subr.bf16.mxu0 %v3344_v6  ;;  %1197 = vmatprep.mubr.bf16.mxu0 %v475_v15  ;;  %v3374_v29 = vld [vmem:[#allocation2 + $0xd4] ss:$8 sps:$4 sm:$0xff]   ;;  %v3376_v30 = vld [vmem:[#allocation2 + $0xd0] ss:$8 sps:$4 sm:$0xff]   ;;  %v3377_v31 = vld [vmem:[#allocation2 + $0xe4] ss:$8 sps:$4 sm:$0xff]  }
  0x5c   : > { %v3379_v32 = vld [vmem:[#allocation2 + $0xe0] ss:$8 sps:$4 sm:$0xff]   ;;  %v3380_v33 = vld [vmem:[#allocation2 + $0xf4] ss:$8 sps:$4 sm:$0xff]   ;;  %v3382_v34 = vld [vmem:[#allocation2 + $0xf0] ss:$8 sps:$4 sm:$0xff]  }
  0x5d   : > { %v3385_v35 = vld [vmem:[#allocation2 + $0x104] ss:$8 sps:$4 sm:$0xff]   ;;  %v467_v37 = vld [vmem:[%s4120_s19 + $0x38] sm:$0xff]  ;;  %v470_v39 = vld [vmem:[%s4120_s19 + $0x50] sm:$0xff]  ;;  %s2794_s23 = sshll.u32 %s4341_s12, 4  ;;  %s4374_s13 = scalar_lea.sflag [#allocation4], %s427_s30  ;;  %s4368_s23 = int_to_ptr.vmem [resolvable:$true] %s2794_s23 }
  0x5e   : > { %1172 = vmatpush1.bf16.msra.mxu0 %v3346_v7  ;;  %v460_v36 = vld [vmem:[%s4120_s19] sm:$0xff]  ;;  %v463_v38 = vld [vmem:[%s4120_s19 + $0x18] sm:$0xff]  ;;  %s3851_s15 = scalar_lea.vmem %s4368_s23, 1792  ;;  %p4449_p1 = scmp.ne.s32.totalorder %s4439_s27, 0 }
  0x5f   : > { %1173 = vmatprep.subr.bf16.mxu0 %v3347_v8  ;;  %v474_v40 = vpack.c.bf16 %v467_v37, %v460_v36  ;;  %v3383_v41 = vld [vmem:[#allocation2 + $0x100] ss:$8 sps:$4 sm:$0xff]   ;;  %v477_v42 = vpack.c.bf16 %v470_v39, %v463_v38  ;;  %v3388_v43 = vld [vmem:[#allocation2 + $0x114] ss:$8 sps:$4 sm:$0xff]   ;;  %v3386_v44 = vld [vmem:[#allocation2 + $0x110] ss:$8 sps:$4 sm:$0xff]   ;;  %p3852_p10 = scmp.ne.s32.totalorder %s4368_s23, %s3851_s15 }
  0x60   : > { %v3391_v45 = vld [vmem:[#allocation2 + $0x124] ss:$8 sps:$4 sm:$0xff]   ;;  %v3389_v46 = vld [vmem:[#allocation2 + $0x120] ss:$8 sps:$4 sm:$0xff]   ;;  %v3394_v47 = vld [vmem:[#allocation2 + $0x134] ss:$8 sps:$4 sm:$0xff]  }
  0x61   : > { %v3392_v48 = vld [vmem:[#allocation2 + $0x130] ss:$8 sps:$4 sm:$0xff]   ;;  %v3397_v49 = vld [vmem:[#allocation2 + $0x144] ss:$8 sps:$4 sm:$0xff]   ;;  %v3395_v50 = vld [vmem:[#allocation2 + $0x140] ss:$8 sps:$4 sm:$0xff]   ;;  %p3853_p2 = pnand %p3852_p10, %p4449_p1 }
  0x62   : > { %1174 = vmatpush1.bf16.msra.mxu0 %v3349_v9  ;;  %v3400_v51 = vld [vmem:[#allocation2 + $0x154] ss:$8 sps:$4 sm:$0xff]   ;;  %v3398_v52 = vld [vmem:[#allocation2 + $0x150] ss:$8 sps:$4 sm:$0xff]   ;;  %v3403_v53 = vld [vmem:[#allocation2 + $0x164] ss:$8 sps:$4 sm:$0xff]  }
  0x63   : > { %1175 = vmatprep.subr.bf16.mxu0 %v3350_v10  ;;  %v3401_v54 = vld [vmem:[#allocation2 + $0x160] ss:$8 sps:$4 sm:$0xff]   ;;  %v3406_v55 = vld [vmem:[#allocation2 + $0x174] ss:$8 sps:$4 sm:$0xff]   ;;  %v3404_v56 = vld [vmem:[#allocation2 + $0x170] ss:$8 sps:$4 sm:$0xff]   ;;  %p3854_p3 = pneg %p3853_p2 }
  0x64   : > { %v3409_v57 = vld [vmem:[#allocation2 + $0x184] ss:$8 sps:$4 sm:$0xff]   ;;  %v3407_v58 = vld [vmem:[#allocation2 + $0x180] ss:$8 sps:$4 sm:$0xff]   ;;  %v3412_v59 = vld [vmem:[#allocation2 + $0x194] ss:$8 sps:$4 sm:$0xff]  }
  0x65   : > { %v3503_v60 = vld [vmem:[%s4419_s4 + $0x4] ss:$8 sps:$4 sm:$0xff]   ;;  %v3505_v61 = vld [vmem:[%s4419_s4] ss:$8 sps:$4 sm:$0xff]   ;;  %v3506_v62 = vld [vmem:[%s4419_s4 + $0x14] ss:$8 sps:$4 sm:$0xff]  }
  0x66   : > { %1176 = vmatpush1.bf16.msra.mxu0 %v3352_v11  ;;  %v3410_v63 = vld [vmem:[#allocation2 + $0x190] ss:$8 sps:$4 sm:$0xff]   ;;  %v3415_v0 = vld [vmem:[#allocation2 + $0x1a4] ss:$8 sps:$4 sm:$0xff]   ;;  %1547 = vmatprep.subr.bf16.mxu1 %v3503_v60  ;;  %v3413_v3 = vld [vmem:[#allocation2 + $0x1a0] ss:$8 sps:$4 sm:$0xff]  }
  0x67   : > { %1177 = vmatprep.subr.bf16.mxu0 %v3353_v12  ;;  %1548 = vmatpush1.bf16.msra.mxu1 %v3505_v61  ;;  %v3508_v1 = vld [vmem:[%s4419_s4 + $0x10] ss:$8 sps:$4 sm:$0xff]   ;;  %v3509_v2 = vld [vmem:[%s4419_s4 + $0x24] ss:$8 sps:$4 sm:$0xff]   ;;  %v3418_v4 = vld [vmem:[#allocation2 + $0x1b4] ss:$8 sps:$4 sm:$0xff]  }
  0x68   : > { %1549 = vmatprep.subr.bf16.mxu1 %v3506_v62  ;;  %v3511_v5 = vld [vmem:[%s4419_s4 + $0x20] ss:$8 sps:$4 sm:$0xff]   ;;  %v3416_v6 = vld [vmem:[#allocation2 + $0x1b0] ss:$8 sps:$4 sm:$0xff]   ;;  %v3421_v7 = vld [vmem:[#allocation2 + $0x1c4] ss:$8 sps:$4 sm:$0xff]  }
  0x69   : > { %v3512_v8 = vld [vmem:[%s4419_s4 + $0x34] ss:$8 sps:$4 sm:$0xff]   ;;  %v3514_v9 = vld [vmem:[%s4419_s4 + $0x30] ss:$8 sps:$4 sm:$0xff]   ;;  %v3515_v10 = vld [vmem:[%s4419_s4 + $0x44] ss:$8 sps:$4 sm:$0xff]  }
  0x6a   : > { %1178 = vmatpush1.bf16.msra.mxu0 %v3355_v16  ;;  %v3419_v11 = vld [vmem:[#allocation2 + $0x1c0] ss:$8 sps:$4 sm:$0xff]   ;;  %v3424_v12 = vld [vmem:[#allocation2 + $0x1d4] ss:$8 sps:$4 sm:$0xff]   ;;  %v3422_v15 = vld [vmem:[#allocation2 + $0x1d0] ss:$8 sps:$4 sm:$0xff]  }
  0x6b   : > { %1179 = vmatprep.subr.bf16.mxu0 %v3356_v17  ;;  %1550 = vmatpush1.bf16.msra.mxu1 %v3508_v1  ;;  %v3517_v13 = vld [vmem:[%s4419_s4 + $0x40] ss:$8 sps:$4 sm:$0xff]   ;;  %v3518_v14 = vld [vmem:[%s4419_s4 + $0x54] ss:$8 sps:$4 sm:$0xff]   ;;  %v3427_v16 = vld [vmem:[#allocation2 + $0x1e4] ss:$8 sps:$4 sm:$0xff]  }
  0x6c   : > { %1551 = vmatprep.subr.bf16.mxu1 %v3509_v2  ;;  %v3520_v17 = vld [vmem:[%s4419_s4 + $0x50] ss:$8 sps:$4 sm:$0xff]   ;;  %v3530_v36 = vld [vmem:[%s4419_s4 + $0x94] ss:$8 sps:$4 sm:$0xff]   ;;  %v3439_v38 = vld [vmem:[#allocation2 + $0x224] ss:$8 sps:$4 sm:$0xff]  }
  0x6d   : > { %v3434_v37 = vld [vmem:[#allocation2 + $0x210] ss:$8 sps:$4 sm:$0xff]   ;;  %v3460_v60 = vld [vmem:[#allocation2 + $0x294] ss:$8 sps:$4 sm:$0xff]   ;;  %v3463_v62 = vld [vmem:[#allocation2 + $0x2a4] ss:$8 sps:$4 sm:$0xff]  }
  0x6e   : > { %1180 = vmatpush1.bf16.msra.mxu0 %v3358_v18  ;;  %v3521_v18 = vld [vmem:[%s4419_s4 + $0x64] ss:$8 sps:$4 sm:$0xff]   ;;  %v3532_v39 = vld [vmem:[%s4419_s4 + $0x90] ss:$8 sps:$4 sm:$0xff]   ;;  %s3930_s21 = smov [#allocation7]  }
  0x6f   : > { %1181 = vmatprep.subr.bf16.mxu0 %v3359_v19  ;;  %1552 = vmatpush1.bf16.msra.mxu1 %v3511_v5  ;;  %v3425_v19 = vld [vmem:[#allocation2 + $0x1e0] ss:$8 sps:$4 sm:$0xff]   ;;  %v3458_v61 = vld [vmem:[#allocation2 + $0x290] ss:$8 sps:$4 sm:$0xff]   ;;  %v3469_v2 = vld [vmem:[#allocation2 + $0x2c4] ss:$8 sps:$4 sm:$0xff]  }
  0x70   : > { %1553 = vmatprep.subr.bf16.mxu1 %v3512_v8  ;;  %v3464_v1 = vld [vmem:[#allocation2 + $0x2b0] ss:$8 sps:$4 sm:$0xff]   ;;  %v3478_v8 = vld [vmem:[#allocation2 + $0x2f4] ss:$8 sps:$4 sm:$0xff]  }
  0x71   : > { %v3470_v5 = vld [vmem:[#allocation2 + $0x2d0] ss:$8 sps:$4 sm:$0xff]  }
  0x72   : > { %1182 = vmatpush1.bf16.msra.mxu0 %v3361_v20  ;;  %v3430_v20 = vld [vmem:[#allocation2 + $0x1f4] ss:$8 sps:$4 sm:$0xff]  }
  0x73   : > { %1183 = vmatprep.subr.bf16.mxu0 %v3362_v21  ;;  %1554 = vmatpush1.bf16.msra.mxu1 %v3514_v9  ;;  %v3523_v21 = vld [vmem:[%s4419_s4 + $0x60] ss:$8 sps:$4 sm:$0xff]   ;;  %v3476_v9 = vld [vmem:[#allocation2 + $0x2f0] ss:$8 sps:$4 sm:$0xff]  }
  0x74   : > { %1555 = vmatprep.subr.bf16.mxu1 %v3515_v10  ;;  %v464_v10 = vld [vmem:[%s4120_s19 + $0x20] sm:$0xff] }
  0x76   : > { %1184 = vmatpush1.bf16.msra.mxu0 %v3364_v22  ;;  %v3524_v22 = vld [vmem:[%s4419_s4 + $0x74] ss:$8 sps:$4 sm:$0xff]  }
  0x77   : > { %1185 = vmatprep.subr.bf16.mxu0 %v3365_v23  ;;  %1556 = vmatpush1.bf16.msra.mxu1 %v3517_v13  ;;  %v3428_v23 = vld [vmem:[#allocation2 + $0x1f0] ss:$8 sps:$4 sm:$0xff]  }
  0x78   : > { %1557 = vmatprep.subr.bf16.mxu1 %v3518_v14  ;;  %v3479_v14 = vld [vmem:[#allocation2 + $0x300] ss:$8 sps:$4 sm:$0xff]  }
  0x7a   : > { %1186 = vmatpush1.bf16.msra.mxu0 %v3367_v24  ;;  %v462_v24 = vld [vmem:[%s4120_s19 + $0x10] sm:$0xff] }
  0x7b   : > { %1187 = vmatprep.subr.bf16.mxu0 %v3368_v25  ;;  %v469_v25 = vld [vmem:[%s4120_s19 + $0x48] sm:$0xff]  ;;  %1558 = vmatpush1.bf16.msra.mxu1 %v3520_v17  ;;  %v3929_v17 = vmov 0  }
  0x7c   : > { %1559 = vmatprep.subr.bf16.mxu1 %v3521_v18  ;;  %v3487_v18 = vld [vmem:[#allocation2 + $0x324] ss:$8 sps:$4 sm:$0xff]  }
  0x7e   : > { %1188 = vmatpush1.bf16.msra.mxu0 %v3370_v26  ;;  %v3433_v26 = vld [vmem:[#allocation2 + $0x204] ss:$8 sps:$4 sm:$0xff]  }
  0x7f   : > { %1189 = vmatprep.subr.bf16.mxu0 %v3371_v27  ;;  %v465_v27 = vld [vmem:[%s4120_s19 + $0x28] sm:$0xff]  ;;  %1560 = vmatpush1.bf16.msra.mxu1 %v3523_v21  ;;  %v3488_v21 = vld [vmem:[#allocation2 + $0x330] ss:$8 sps:$4 sm:$0xff]  }
  0x80   : > { %1561 = vmatprep.subr.bf16.mxu1 %v3524_v22  ;;  %v3493_v22 = vld [vmem:[#allocation2 + $0x344] ss:$8 sps:$4 sm:$0xff]  }
  0x82   : > { %1190 = vmatpush1.bf16.msra.mxu0 %v3373_v28  ;;  %v472_v28 = vld [vmem:[%s4120_s19 + $0x60] sm:$0xff] }
  0x83   : > { %1191 = vmatprep.subr.bf16.mxu0 %v3374_v29  ;;  %v3526_v29 = vld [vmem:[%s4419_s4 + $0x70] ss:$8 sps:$4 sm:$0xff]  }
  0x84   : > { %1562 = vmatpush1.bf16.msra.mxu1 %v3526_v29  ;;  %v3500_v29 = vld [vmem:[#allocation2 + $0x370] ss:$8 sps:$4 sm:$0xff]  }
  0x86   : > { %1192 = vmatpush1.bf16.msra.mxu0 %v3376_v30  ;;  %v3527_v30 = vld [vmem:[%s4419_s4 + $0x84] ss:$8 sps:$4 sm:$0xff]  }
  0x87   : > { %1193 = vmatprep.subr.bf16.mxu0 %v3377_v31  ;;  %v3431_v31 = vld [vmem:[#allocation2 + $0x200] ss:$8 sps:$4 sm:$0xff]   ;;  %1563 = vmatprep.subr.bf16.mxu1 %v3527_v30  ;;  %v466_v30 = vld [vmem:[%s4120_s19 + $0x30] sm:$0xff] }
  0x8a   : > { %1194 = vmatpush1.bf16.msra.mxu0 %v3379_v32  ;;  %v476_v32 = vpack.c.bf16 %v469_v25, %v462_v24  ;;  %v3496_v24 = vld [vmem:[#allocation2 + $0x354] ss:$8 sps:$4 sm:$0xff]   ;;  %v3494_v25 = vld [vmem:[#allocation2 + $0x350] ss:$8 sps:$4 sm:$0xff]  }
  0x8b   : > { %1195 = vmatprep.subr.bf16.mxu0 %v3380_v33  ;;  %v3436_v33 = vld [vmem:[#allocation2 + $0x214] ss:$8 sps:$4 sm:$0xff]  }
  0x8e   : > { %1196 = vmatpush1.bf16.msra.mxu0 %v3382_v34  ;;  %v479_v34 = vpack.c.bf16 %v472_v28, %v465_v27  ;;  %v3497_v27 = vld [vmem:[#allocation2 + $0x360] ss:$8 sps:$4 sm:$0xff]   ;;  %v3502_v28 = vld [vmem:[#allocation2 + $0x374] ss:$8 sps:$4 sm:$0xff]  }
  0x8f   : > { %1208 = vmatprep.subr.bf16.mxu0 %v3385_v35  ;;  %v3529_v35 = vld [vmem:[%s4419_s4 + $0x80] ss:$8 sps:$4 sm:$0xff]  }
  0x90   : > { %1564 = vmatpush1.bf16.msra.mxu1 %v3529_v35  ;;  %v3547_v35 = vld [vmem:[%s4419_s4 + $0xe0] ss:$8 sps:$4 sm:$0xff]  }
  0x91   : > { %1198 = vmatmul.mubr.bf16.vlgmr.msra.gmra.mrb[0].mxu0 %v474_v40  ;;  %v3533_v40 = vld [vmem:[%s4419_s4 + $0xa4] ss:$8 sps:$4 sm:$0xff]   ;;  %1565 = vmatprep.subr.bf16.mxu1 %v3530_v36  ;;  %v3548_v36 = vld [vmem:[%s4419_s4 + $0xf4] ss:$8 sps:$4 sm:$0xff]  }
  0x92   : > { %1209 = vmatpush1.bf16.msra.mxu0 %v3383_v41  ;;  %1240 = vmatprep.mubr.bf16.mxu0 %v477_v42  ;;  %v3437_v41 = vld [vmem:[#allocation2 + $0x220] ss:$8 sps:$4 sm:$0xff]   ;;  %v3442_v42 = vld [vmem:[#allocation2 + $0x234] ss:$8 sps:$4 sm:$0xff]  }
  0x93   : > { %1210 = vmatprep.subr.bf16.mxu0 %v3388_v43  ;;  %v3535_v43 = vld [vmem:[%s4419_s4 + $0xa0] ss:$8 sps:$4 sm:$0xff]  }
  0x94   : > { %1566 = vmatpush1.bf16.msra.mxu1 %v3532_v39  ;;  %v595_v39 = vlaneseq }
  0x95   : > { %1567 = vmatprep.subr.bf16.mxu1 %v3533_v40 }
  0x96   : > { %1211 = vmatpush1.bf16.msra.mxu0 %v3386_v44  ;;  %v3536_v44 = vld [vmem:[%s4419_s4 + $0xb4] ss:$8 sps:$4 sm:$0xff]   ;;  %v4236_v40 = vshrl.u32 %v595_v39, 7  ;;  %v3658_v39 = vld [vmem:[#allocation5 + $0x2ec] ss:$28 sps:$4 sm:$0xff]  }
  0x97   : > { %1212 = vmatprep.subr.bf16.mxu0 %v3391_v45  ;;  %v3440_v45 = vld [vmem:[#allocation2 + $0x230] ss:$8 sps:$4 sm:$0xff]  }
  0x98   : > { %1568 = vmatpush1.bf16.msra.mxu1 %v3535_v43  ;;  %v4245_v43 = vsub.s32 1, %v4236_v40 }
  0x99   : > { %1569 = vmatprep.subr.bf16.mxu1 %v3536_v44 }
  0x9a   : > { %1213 = vmatpush1.bf16.msra.mxu0 %v3389_v46  ;;  %v3445_v46 = vld [vmem:[#allocation2 + $0x244] ss:$8 sps:$4 sm:$0xff]  }
  0x9b   : > { %1214 = vmatprep.subr.bf16.mxu0 %v3394_v47  ;;  %v3538_v47 = vld [vmem:[%s4419_s4 + $0xb0] ss:$8 sps:$4 sm:$0xff]  }
  0x9c   : > { %1570 = vmatpush1.bf16.msra.mxu1 %v3538_v47 }
  0x9e   : > { %1215 = vmatpush1.bf16.msra.mxu0 %v3392_v48  ;;  %v3539_v48 = vld [vmem:[%s4419_s4 + $0xc4] ss:$8 sps:$4 sm:$0xff]  }
  0x9f   : > { %1216 = vmatprep.subr.bf16.mxu0 %v3397_v49  ;;  %v3443_v49 = vld [vmem:[#allocation2 + $0x240] ss:$8 sps:$4 sm:$0xff]   ;;  %1571 = vmatprep.subr.bf16.mxu1 %v3539_v48 }
  0xa2   : > { %1217 = vmatpush1.bf16.msra.mxu0 %v3395_v50  ;;  %v3448_v50 = vld [vmem:[#allocation2 + $0x254] ss:$8 sps:$4 sm:$0xff]  }
  0xa3   : > { %1218 = vmatprep.subr.bf16.mxu0 %v3400_v51  ;;  %v3541_v51 = vld [vmem:[%s4419_s4 + $0xc0] ss:$8 sps:$4 sm:$0xff]  }
  0xa4   : > { %1572 = vmatpush1.bf16.msra.mxu1 %v3541_v51 }
  0xa6   : > { %1219 = vmatpush1.bf16.msra.mxu0 %v3398_v52  ;;  %v3542_v52 = vld [vmem:[%s4419_s4 + $0xd4] ss:$8 sps:$4 sm:$0xff]  }
  0xa7   : > { %1220 = vmatprep.subr.bf16.mxu0 %v3403_v53  ;;  %v3446_v53 = vld [vmem:[#allocation2 + $0x250] ss:$8 sps:$4 sm:$0xff]   ;;  %1573 = vmatprep.subr.bf16.mxu1 %v3542_v52 }
  0xaa   : > { %1221 = vmatpush1.bf16.msra.mxu0 %v3401_v54  ;;  %v3451_v54 = vld [vmem:[#allocation2 + $0x264] ss:$8 sps:$4 sm:$0xff]  }
  0xab   : > { %1222 = vmatprep.subr.bf16.mxu0 %v3406_v55  ;;  %v3449_v55 = vld [vmem:[#allocation2 + $0x260] ss:$8 sps:$4 sm:$0xff]  }
  0xae   : > { %1223 = vmatpush1.bf16.msra.mxu0 %v3404_v56  ;;  %v3454_v56 = vld [vmem:[#allocation2 + $0x274] ss:$8 sps:$4 sm:$0xff]  }
  0xaf   : > { %1224 = vmatprep.subr.bf16.mxu0 %v3409_v57  ;;  %v3452_v57 = vld [vmem:[#allocation2 + $0x270] ss:$8 sps:$4 sm:$0xff]  }
  0xb2   : > { %1225 = vmatpush1.bf16.msra.mxu0 %v3407_v58  ;;  %v3457_v58 = vld [vmem:[#allocation2 + $0x284] ss:$8 sps:$4 sm:$0xff]  }
  0xb3   : > { %1226 = vmatprep.subr.bf16.mxu0 %v3412_v59  ;;  %v3455_v59 = vld [vmem:[#allocation2 + $0x280] ss:$8 sps:$4 sm:$0xff]  }
  0xb6   : > { %1227 = vmatpush1.bf16.msra.mxu0 %v3410_v63  ;;  %v3461_v63 = vld [vmem:[#allocation2 + $0x2a0] ss:$8 sps:$4 sm:$0xff]  }
  0xb7   : > { %1228 = vmatprep.subr.bf16.mxu0 %v3415_v0  ;;  %v3466_v0 = vld [vmem:[#allocation2 + $0x2b4] ss:$8 sps:$4 sm:$0xff]  }
  0xba   : > { %1229 = vmatpush1.bf16.msra.mxu0 %v3413_v3  ;;  %v3467_v3 = vld [vmem:[#allocation2 + $0x2c0] ss:$8 sps:$4 sm:$0xff]  }
  0xbb   : > { %1230 = vmatprep.subr.bf16.mxu0 %v3418_v4  ;;  %v3472_v4 = vld [vmem:[#allocation2 + $0x2d4] ss:$8 sps:$4 sm:$0xff]  }
  0xbe   : > { %1231 = vmatpush1.bf16.msra.mxu0 %v3416_v6  ;;  %v3475_v6 = vld [vmem:[#allocation2 + $0x2e4] ss:$8 sps:$4 sm:$0xff]  }
  0xbf   : > { %1232 = vmatprep.subr.bf16.mxu0 %v3421_v7  ;;  %v3473_v7 = vld [vmem:[#allocation2 + $0x2e0] ss:$8 sps:$4 sm:$0xff]  }
  0xc2   : > { %1233 = vmatpush1.bf16.msra.mxu0 %v3419_v11  ;;  %v471_v11 = vld [vmem:[%s4120_s19 + $0x58] sm:$0xff] }
  0xc3   : > { %1234 = vmatprep.subr.bf16.mxu0 %v3424_v12  ;;  %v3481_v12 = vld [vmem:[#allocation2 + $0x304] ss:$8 sps:$4 sm:$0xff]   ;;  %v478_v13 = vpack.c.bf16 %v471_v11, %v464_v10  ;;  %v3572_v10 = vld [vmem:[%s4421_s6 + $0x70] ss:$8 sps:$4 sm:$0xff]  }
  0xc4   : > { %v3577_v11 = vld [vmem:[#allocation5 + $0x4] ss:$28 sps:$4 sm:$0xff]  }
  0xc6   : > { %1235 = vmatpush1.bf16.msra.mxu0 %v3422_v15  ;;  %v3484_v15 = vld [vmem:[#allocation2 + $0x314] ss:$8 sps:$4 sm:$0xff]  }
  0xc7   : > { %1236 = vmatprep.subr.bf16.mxu0 %v3427_v16  ;;  %v3482_v16 = vld [vmem:[#allocation2 + $0x310] ss:$8 sps:$4 sm:$0xff]  }
  0xca   : > { %1237 = vmatpush1.bf16.msra.mxu0 %v3425_v19  ;;  %v3485_v19 = vld [vmem:[#allocation2 + $0x320] ss:$8 sps:$4 sm:$0xff]  }
  0xcb   : > { %1238 = vmatprep.subr.bf16.mxu0 %v3430_v20  ;;  %v3490_v20 = vld [vmem:[#allocation2 + $0x334] ss:$8 sps:$4 sm:$0xff]  }
  0xce   : > { %1239 = vmatpush1.bf16.msra.mxu0 %v3428_v23  ;;  %v3491_v23 = vld [vmem:[#allocation2 + $0x340] ss:$8 sps:$4 sm:$0xff]  }
  0xcf   : > { %1251 = vmatprep.subr.bf16.mxu0 %v3433_v26  ;;  %v3499_v26 = vld [vmem:[#allocation2 + $0x364] ss:$8 sps:$4 sm:$0xff]  }
  0xd1   : > { %1241 = vmatmul.mubr.bf16.vlgmr.msra.gmra.mrb[0].mxu0 %v476_v32 }
  0xd2   : > { %1252 = vmatpush1.bf16.msra.mxu0 %v3431_v31  ;;  %1283 = vmatprep.mubr.bf16.mxu0 %v479_v34  ;;  %v473_v31 = vld [vmem:[%s4120_s19 + $0x68] sm:$0xff] }
  0xd3   : > { %1253 = vmatprep.subr.bf16.mxu0 %v3436_v33  ;;  %v480_v32 = vpack.c.bf16 %v473_v31, %v466_v30  ;;  %v3544_v33 = vld [vmem:[%s4419_s4 + $0xd0] ss:$8 sps:$4 sm:$0xff]   ;;  %v3545_v34 = vld [vmem:[%s4419_s4 + $0xe4] ss:$8 sps:$4 sm:$0xff]  }
  0xd4   : > { %1574 = vmatpush1.bf16.msra.mxu1 %v3544_v33  ;;  %v3632_v30 = vld [vmem:[#allocation5 + $0x208] ss:$28 sps:$4 sm:$0xff]  }
  0xd5   : > { %1575 = vmatprep.subr.bf16.mxu1 %v3545_v34  ;;  %v3634_v31 = vld [vmem:[#allocation5 + $0x20c] ss:$28 sps:$4 sm:$0xff]   ;;  %v3640_v33 = vld [vmem:[#allocation5 + $0x244] ss:$28 sps:$4 sm:$0xff]   ;;  %v3644_v34 = vld [vmem:[#allocation5 + $0x278] ss:$28 sps:$4 sm:$0xff]  }
  0xd6   : > { %1254 = vmatpush1.bf16.msra.mxu0 %v3434_v37  ;;  %v3550_v37 = vld [vmem:[%s4419_s4 + $0xf0] ss:$8 sps:$4 sm:$0xff]  }
  0xd7   : > { %1255 = vmatprep.subr.bf16.mxu0 %v3439_v38  ;;  %v3553_v38 = vld [vmem:[%s4421_s6 + $0x4] ss:$8 sps:$4 sm:$0xff]  }
  0xd8   : > { %1576 = vmatpush1.bf16.msra.mxu1 %v3547_v35  ;;  %v3646_v35 = vld [vmem:[#allocation5 + $0x27c] ss:$28 sps:$4 sm:$0xff]  }
  0xd9   : > { %1577 = vmatprep.subr.bf16.mxu1 %v3548_v36  ;;  %v3650_v36 = vld [vmem:[#allocation5 + $0x2b0] ss:$28 sps:$4 sm:$0xff]  }
  0xda   : > { %1256 = vmatpush1.bf16.msra.mxu0 %v3437_v41  ;;  %v4239_v41 = vsub.s32 0, %v4236_v40 }
  0xdb   : > { %1257 = vmatprep.subr.bf16.mxu0 %v3442_v42  ;;  %v593_v42 = vld [vmem:[%s4418_s3] sm:$0x3] }
  0xdc   : > { %1578 = vmatpush1.bf16.msra.mxu1 %v3550_v37  ;;  %v598_v44 = vrot.slane %v593_v42, %v4239_v41  ;;  %v3652_v37 = vld [vmem:[#allocation5 + $0x2b4] ss:$28 sps:$4 sm:$0xff]  }
  0xdd   : > { %1711 = vmatprep.subr.bf16.mxu1 %v3553_v38  ;;  %v3656_v38 = vld [vmem:[#allocation5 + $0x2e8] ss:$28 sps:$4 sm:$0xff]  }
  0xde   : > { %1258 = vmatpush1.bf16.msra.mxu0 %v3440_v45  ;;  %v602_v45 = vrot.slane %v593_v42, %v4245_v43  ;;  %v1375_v42 = vld [vmem:[%s4420_s5] sm:$0x3] }
  0xdf   : > { %1259 = vmatprep.subr.bf16.mxu0 %v3445_v46 }
  0xe2   : > { %1260 = vmatpush1.bf16.msra.mxu0 %v3443_v49 }
  0xe3   : > { %1261 = vmatprep.subr.bf16.mxu0 %v3448_v50 }
  0xe6   : > { %1262 = vmatpush1.bf16.msra.mxu0 %v3446_v53 }
  0xe7   : > { %1263 = vmatprep.subr.bf16.mxu0 %v3451_v54 }
  0xea   : > { %1264 = vmatpush1.bf16.msra.mxu0 %v3449_v55 }
  0xeb   : > { %1265 = vmatprep.subr.bf16.mxu0 %v3454_v56 }
  0xee   : > { %1266 = vmatpush1.bf16.msra.mxu0 %v3452_v57 }
  0xef   : > { %1267 = vmatprep.subr.bf16.mxu0 %v3457_v58 }
  0xf2   : > { %1268 = vmatpush1.bf16.msra.mxu0 %v3455_v59 }
  0xf3   : > { %1269 = vmatprep.subr.bf16.mxu0 %v3460_v60  ;;  %v3551_v60 = vld [vmem:[%s4421_s6] ss:$8 sps:$4 sm:$0xff]  }
  0xf6   : > { %1270 = vmatpush1.bf16.msra.mxu0 %v3458_v61  ;;  %v3556_v61 = vld [vmem:[%s4421_s6 + $0x14] ss:$8 sps:$4 sm:$0xff]  }
  0xf7   : > { %1271 = vmatprep.subr.bf16.mxu0 %v3463_v62  ;;  %v3554_v62 = vld [vmem:[%s4421_s6 + $0x10] ss:$8 sps:$4 sm:$0xff]  }
  0xfa   : > { %1272 = vmatpush1.bf16.msra.mxu0 %v3461_v63  ;;  %v3559_v63 = vld [vmem:[%s4421_s6 + $0x24] ss:$8 sps:$4 sm:$0xff]  }
  0xfb   : > { %1273 = vmatprep.subr.bf16.mxu0 %v3466_v0  ;;  %v3557_v0 = vld [vmem:[%s4421_s6 + $0x20] ss:$8 sps:$4 sm:$0xff]  }
  0xfe   : > { %1274 = vmatpush1.bf16.msra.mxu0 %v3464_v1  ;;  %v3562_v1 = vld [vmem:[%s4421_s6 + $0x34] ss:$8 sps:$4 sm:$0xff]  }
  0xff   : > { %1275 = vmatprep.subr.bf16.mxu0 %v3469_v2  ;;  %v3560_v2 = vld [vmem:[%s4421_s6 + $0x30] ss:$8 sps:$4 sm:$0xff]  }
 0x102   : > { %1276 = vmatpush1.bf16.msra.mxu0 %v3467_v3  ;;  %v3565_v3 = vld [vmem:[%s4421_s6 + $0x44] ss:$8 sps:$4 sm:$0xff]  }
 0x103   : > { %1277 = vmatprep.subr.bf16.mxu0 %v3472_v4  ;;  %v3563_v4 = vld [vmem:[%s4421_s6 + $0x40] ss:$8 sps:$4 sm:$0xff]  }
 0x106   : > { %1278 = vmatpush1.bf16.msra.mxu0 %v3470_v5  ;;  %v3568_v5 = vld [vmem:[%s4421_s6 + $0x54] ss:$8 sps:$4 sm:$0xff]  }
 0x107   : > { %1279 = vmatprep.subr.bf16.mxu0 %v3475_v6  ;;  %v3566_v6 = vld [vmem:[%s4421_s6 + $0x50] ss:$8 sps:$4 sm:$0xff]  }
 0x10a   : > { %1280 = vmatpush1.bf16.msra.mxu0 %v3473_v7  ;;  %v3571_v7 = vld [vmem:[%s4421_s6 + $0x64] ss:$8 sps:$4 sm:$0xff]  }
 0x10b   : > { %1281 = vmatprep.subr.bf16.mxu0 %v3478_v8  ;;  %v3569_v8 = vld [vmem:[%s4421_s6 + $0x60] ss:$8 sps:$4 sm:$0xff]  }
 0x10e   : > { %1282 = vmatpush1.bf16.msra.mxu0 %v3476_v9  ;;  %v3574_v9 = vld [vmem:[%s4421_s6 + $0x74] ss:$8 sps:$4 sm:$0xff]  }
 0x10f   : > { %1294 = vmatprep.subr.bf16.mxu0 %v3481_v12  ;;  %v3578_v12 = vld [vmem:[#allocation5 + $0x10] ss:$28 sps:$4 sm:$0xff]  }
 0x111   : > { %1284 = vmatmul.mubr.bf16.vlgmr.msra.gmra.mrb[0].mxu0 %v478_v13  ;;  %v3580_v13 = vld [vmem:[#allocation5 + $0x14] ss:$28 sps:$4 sm:$0xff]  }
 0x112   : > { %1295 = vmatpush1.bf16.msra.mxu0 %v3479_v14  ;;  %1326 = vmatprep.mubr.bf16.mxu0 %v3929_v17  ;;  %v3584_v14 = vld [vmem:[#allocation5 + $0x48] ss:$28 sps:$4 sm:$0xff]  }
 0x113   : > { %1296 = vmatprep.subr.bf16.mxu0 %v3484_v15  ;;  %v3586_v15 = vld [vmem:[#allocation5 + $0x4c] ss:$28 sps:$4 sm:$0xff]  }
 0x116   : > { %1297 = vmatpush1.bf16.msra.mxu0 %v3482_v16  ;;  %v3590_v16 = vld [vmem:[#allocation5 + $0x80] ss:$28 sps:$4 sm:$0xff]  }
 0x117   : > { %1298 = vmatprep.subr.bf16.mxu0 %v3487_v18  ;;  %v3596_v18 = vld [vmem:[#allocation5 + $0xb8] ss:$28 sps:$4 sm:$0xff]  }
 0x11a   : > { %1299 = vmatpush1.bf16.msra.mxu0 %v3485_v19  ;;  %v3598_v19 = vld [vmem:[#allocation5 + $0xbc] ss:$28 sps:$4 sm:$0xff]  }
 0x11b   : > { %1300 = vmatprep.subr.bf16.mxu0 %v3490_v20  ;;  %v3602_v20 = vld [vmem:[#allocation5 + $0xf0] ss:$28 sps:$4 sm:$0xff]  }
 0x11e   : > { %1301 = vmatpush1.bf16.msra.mxu0 %v3488_v21  ;;  %v3604_v21 = vld [vmem:[#allocation5 + $0xf4] ss:$28 sps:$4 sm:$0xff]  }
 0x11f   : > { %1302 = vmatprep.subr.bf16.mxu0 %v3493_v22  ;;  %v3608_v22 = vld [vmem:[#allocation5 + $0x128] ss:$28 sps:$4 sm:$0xff]  }
 0x122   : > { %1303 = vmatpush1.bf16.msra.mxu0 %v3491_v23  ;;  %v3610_v23 = vld [vmem:[#allocation5 + $0x12c] ss:$28 sps:$4 sm:$0xff]  }
 0x123   : > { %1304 = vmatprep.subr.bf16.mxu0 %v3496_v24  ;;  %v3614_v24 = vld [vmem:[#allocation5 + $0x160] ss:$28 sps:$4 sm:$0xff]  }
 0x126   : > { %1305 = vmatpush1.bf16.msra.mxu0 %v3494_v25  ;;  %v3616_v25 = vld [vmem:[#allocation5 + $0x164] ss:$28 sps:$4 sm:$0xff]  }
 0x127   : > { %1306 = vmatprep.subr.bf16.mxu0 %v3499_v26  ;;  %v3620_v26 = vld [vmem:[#allocation5 + $0x198] ss:$28 sps:$4 sm:$0xff]  }
 0x12a   : > { %1307 = vmatpush1.bf16.msra.mxu0 %v3497_v27  ;;  %v3622_v27 = vld [vmem:[#allocation5 + $0x19c] ss:$28 sps:$4 sm:$0xff]  }
 0x12b   : > { %1308 = vmatprep.subr.bf16.mxu0 %v3502_v28  ;;  %v3626_v28 = vld [vmem:[#allocation5 + $0x1d0] ss:$28 sps:$4 sm:$0xff]  }
 0x12e   : > { %1309 = vmatpush1.bf16.msra.mxu0 %v3500_v29  ;;  %v3628_v29 = vld [vmem:[#allocation5 + $0x1d4] ss:$28 sps:$4 sm:$0xff]  }
 0x12f   : > { %2587 = vmatprep.subr.bf16.mxu0 %v3580_v13  ;;  %v3605_v13 = vld [vmem:[#allocation5 + $0x118] ss:$28 sps:$4 sm:$0xff]  }
 0x131   : > { %1327 = vmatmul.mubr.bf16.vlgmr.msra.gmra.mrb[0].mxu0 %v480_v32  ;;  %v3638_v32 = vld [vmem:[#allocation5 + $0x240] ss:$28 sps:$4 sm:$0xff]  }
 0x132   : > { %2588 = vmatpush1.bf16.msra.mxu0 %v3578_v12  ;;  %v3607_v12 = vld [vmem:[#allocation5 + $0x11c] ss:$28 sps:$4 sm:$0xff]  }
 0x133   : > { %2589 = vmatprep.subr.bf16.mxu0 %v3586_v15  ;;  %v3611_v15 = vld [vmem:[#allocation5 + $0x150] ss:$28 sps:$4 sm:$0xff]  }
 0x136   : > { %2590 = vmatpush1.bf16.msra.mxu0 %v3584_v14  ;;  %v3613_v14 = vld [vmem:[#allocation5 + $0x154] ss:$28 sps:$4 sm:$0xff]  }
 0x204   : > { %v1328_v46 = vpop.f32.mrb[0].mxu0 }
 0x205   : > { %v3249_v47 = vadd.f32 %v1328_v46, %v598_v44  ;;  %v1330_v48 = vpop.f32.mrb[1].mxu0 }
 0x206   : > { %v3250_v49 = vadd.f32 %v1330_v48, %v602_v45  ;;  %v1332_v50 = vpop.f32.mrb[2].mxu0 }
 0x207   : > { %v3251_v51 = vadd.f32 %v1332_v50, %v598_v44  ;;  %v1334_v52 = vpop.f32.mrb[3].mxu0  ;;  %v1337_v54 = vmax.f32 %v3249_v47, 0.0  ;;  %v1380_v44 = vrot.slane %v1375_v42, %v4239_v41 }
 0x208   : > { %v3252_v53 = vadd.f32 %v1334_v52, %v602_v45  ;;  %v1338_v56 = vmax.f32 %v3250_v49, 0.0  ;;  %v1384_v45 = vrot.slane %v1375_v42, %v4245_v43 }
 0x209   : > { %v1339_v55 = vmax.f32 %v3251_v51, 0.0 }
 0x20a   : > { %v1340_v57 = vmax.f32 %v3252_v53, 0.0 }
 0x20b   : > { %v1341_v58 = vpack.c.bf16 %v1339_v55, %v1337_v54 }
 0x20c   : > { %v1342_v59 = vpack.c.bf16 %v1340_v57, %v1338_v56 }
 0x20e   : > { %1579 = vmatprep.mubr.bf16.mxu1 %v1342_v59 }
 0x20f   : > { %1580 = vmatmul.mubr.bf16.vlgmr.msra.gmra.mrb[0].mxu1 %v1341_v58  ;;  %v1590_v58 = vld [vmem:[%s449_s22] sm:$0xff] }
 0x210   : > { %1712 = vmatpush1.bf16.msra.mxu1 %v3551_v60  ;;  %1743 = vmatprep.mubr.bf16.mxu1 %v3929_v17  ;;  %v3592_v17 = vld [vmem:[#allocation5 + $0x84] ss:$28 sps:$4 sm:$0xff]   ;;  %v1591_v60 = vld [vmem:[%s449_s22 + $0x8] sm:$0xff]  ;;  %s3855_s22 = sshll.u32 %s3930_s21, 4  ;;  %s3856_s22 = int_to_ptr.vmem [resolvable:$false] %s3855_s22 }
 0x211   : > { %1713 = vmatprep.subr.bf16.mxu1 %v3556_v61  ;;  %2591 = vmatprep.subr.bf16.mxu0 %v3592_v17  ;;  %v3617_v17 = vld [vmem:[#allocation5 + $0x188] ss:$28 sps:$4 sm:$0xff]   ;;  %s3857_s29 = scalar_lea.vmem %s3856_s22, 3584  ;;  %p3858_p4 = scmp.lt.s32.totalorder %s4368_s23, %s3856_s22 }
 0x212   : > { %2592 = vmatpush1.bf16.msra.mxu0 %v3590_v16  ;;  %v3619_v16 = vld [vmem:[#allocation5 + $0x18c] ss:$28 sps:$4 sm:$0xff]   ;;  %p3859_p7 = scmp.lt.s32.totalorder %s3857_s29, %s3851_s15 }
 0x213   : > { %2593 = vmatprep.subr.bf16.mxu0 %v3598_v19  ;;  %v3623_v19 = vld [vmem:[#allocation5 + $0x1c0] ss:$28 sps:$4 sm:$0xff]  }
 0x214   : > { %1714 = vmatpush1.bf16.msra.mxu1 %v3554_v62  ;;  %p3860_p8 = por %p3859_p7, %p3858_p4 }
 0x215   : > { %1715 = vmatprep.subr.bf16.mxu1 %v3559_v63 }
 0x216   : > { %2594 = vmatpush1.bf16.msra.mxu0 %v3596_v18  ;;  %v3625_v18 = vld [vmem:[#allocation5 + $0x1c4] ss:$28 sps:$4 sm:$0xff]   ;;  %p3861_p11 = pnand %p3860_p8, %p3854_p3 }
 0x217   : > { %2595 = vmatprep.subr.bf16.mxu0 %v3604_v21  ;;  %v3629_v21 = vld [vmem:[#allocation5 + $0x1f8] ss:$28 sps:$4 sm:$0xff]  }
 0x218   : > { %1716 = vmatpush1.bf16.msra.mxu1 %v3557_v0 }
 0x219   : > { %1717 = vmatprep.subr.bf16.mxu1 %v3562_v1 }
 0x21a   : > { %2596 = vmatpush1.bf16.msra.mxu0 %v3602_v20  ;;  %v3631_v20 = vld [vmem:[#allocation5 + $0x1fc] ss:$28 sps:$4 sm:$0xff]  }
 0x21b   : > { %2597 = vmatprep.subr.bf16.mxu0 %v3610_v23  ;;  %v3635_v23 = vld [vmem:[#allocation5 + $0x230] ss:$28 sps:$4 sm:$0xff]  }
 0x21c   : > { %1718 = vmatpush1.bf16.msra.mxu1 %v3560_v2  ;;  %v3575_v2 = vld [vmem:[#allocation5] ss:$28 sps:$4 sm:$0xff]  }
 0x21d   : > { %1719 = vmatprep.subr.bf16.mxu1 %v3565_v3 }
 0x21e   : > { %2598 = vmatpush1.bf16.msra.mxu0 %v3608_v22  ;;  %v3637_v22 = vld [vmem:[#allocation5 + $0x234] ss:$28 sps:$4 sm:$0xff]  }
 0x21f   : > { %2599 = vmatprep.subr.bf16.mxu0 %v3616_v25  ;;  %v3641_v25 = vld [vmem:[#allocation5 + $0x268] ss:$28 sps:$4 sm:$0xff]  }
 0x220   : > { %1720 = vmatpush1.bf16.msra.mxu1 %v3563_v4  ;;  %v3583_v4 = vld [vmem:[#allocation5 + $0x3c] ss:$28 sps:$4 sm:$0xff]  }
 0x221   : > { %1721 = vmatprep.subr.bf16.mxu1 %v3568_v5  ;;  %v3581_v5 = vld [vmem:[#allocation5 + $0x38] ss:$28 sps:$4 sm:$0xff]  }
 0x222   : > { %2600 = vmatpush1.bf16.msra.mxu0 %v3614_v24  ;;  %v3643_v24 = vld [vmem:[#allocation5 + $0x26c] ss:$28 sps:$4 sm:$0xff]  }
 0x223   : > { %2601 = vmatprep.subr.bf16.mxu0 %v3622_v27  ;;  %v3647_v27 = vld [vmem:[#allocation5 + $0x2a0] ss:$28 sps:$4 sm:$0xff]  }
 0x224   : > { %1722 = vmatpush1.bf16.msra.mxu1 %v3566_v6  ;;  %v3589_v6 = vld [vmem:[#allocation5 + $0x74] ss:$28 sps:$4 sm:$0xff]  }
 0x225   : > { %1723 = vmatprep.subr.bf16.mxu1 %v3571_v7  ;;  %v3587_v7 = vld [vmem:[#allocation5 + $0x70] ss:$28 sps:$4 sm:$0xff]  }
 0x226   : > { %2602 = vmatpush1.bf16.msra.mxu0 %v3620_v26  ;;  %v3649_v26 = vld [vmem:[#allocation5 + $0x2a4] ss:$28 sps:$4 sm:$0xff]  }
 0x227   : > { %2603 = vmatprep.subr.bf16.mxu0 %v3628_v29  ;;  %v3653_v29 = vld [vmem:[#allocation5 + $0x2d8] ss:$28 sps:$4 sm:$0xff]  }
 0x228   : > { %1724 = vmatpush1.bf16.msra.mxu1 %v3569_v8  ;;  %v3595_v8 = vld [vmem:[#allocation5 + $0xac] ss:$28 sps:$4 sm:$0xff]  }
 0x229   : > { %1725 = vmatprep.subr.bf16.mxu1 %v3574_v9  ;;  %v3593_v9 = vld [vmem:[#allocation5 + $0xa8] ss:$28 sps:$4 sm:$0xff]  }
 0x22a   : > { %2604 = vmatpush1.bf16.msra.mxu0 %v3626_v28  ;;  %v3655_v28 = vld [vmem:[#allocation5 + $0x2dc] ss:$28 sps:$4 sm:$0xff]  }
 0x22b   : > { %2605 = vmatprep.subr.bf16.mxu0 %v3634_v31  ;;  %v3659_v31 = vld [vmem:[#allocation5 + $0x310] ss:$28 sps:$4 sm:$0xff]  }
 0x22c   : > { %1726 = vmatpush1.bf16.msra.mxu1 %v3572_v10  ;;  %v3601_v10 = vld [vmem:[#allocation5 + $0xe4] ss:$28 sps:$4 sm:$0xff]  }
 0x22d   : > { %2501 = vmatprep.subr.bf16.mxu1 %v3577_v11  ;;  %v3599_v11 = vld [vmem:[#allocation5 + $0xe0] ss:$28 sps:$4 sm:$0xff]  }
 0x22e   : > { %2606 = vmatpush1.bf16.msra.mxu0 %v3632_v30  ;;  %v3661_v30 = vld [vmem:[#allocation5 + $0x314] ss:$28 sps:$4 sm:$0xff]  }
 0x22f   : > { %2607 = vmatprep.subr.bf16.mxu0 %v3640_v33  ;;  %v3662_v33 = vld [vmem:[#allocation5 + $0x320] ss:$28 sps:$4 sm:$0xff]  }
 0x232   : > { %2608 = vmatpush1.bf16.msra.mxu0 %v3638_v32  ;;  %v3664_v32 = vld [vmem:[#allocation5 + $0x324] ss:$28 sps:$4 sm:$0xff]  }
 0x233   : > { %2609 = vmatprep.subr.bf16.mxu0 %v3646_v35  ;;  %v3665_v35 = vld [vmem:[#allocation5 + $0x348] ss:$28 sps:$4 sm:$0xff]  }
 0x236   : > { %2610 = vmatpush1.bf16.msra.mxu0 %v3644_v34  ;;  %v3667_v34 = vld [vmem:[#allocation5 + $0x34c] ss:$28 sps:$4 sm:$0xff]  }
 0x237   : > { %2611 = vmatprep.subr.bf16.mxu0 %v3652_v37  ;;  %v3668_v37 = vld [vmem:[#allocation5 + $0x358] ss:$28 sps:$4 sm:$0xff]  }
 0x23a   : > { %2612 = vmatpush1.bf16.msra.mxu0 %v3650_v36  ;;  %v3670_v36 = vld [vmem:[#allocation5 + $0x35c] ss:$28 sps:$4 sm:$0xff]  }
 0x23b   : > { %2613 = vmatprep.subr.bf16.mxu0 %v3658_v39  ;;  %v1619_v39 = vld [vmem:[%s4422_s7] sm:$0x3] }
 0x23c   : > { %v1624_v42 = vrot.slane %v1619_v39, %v4239_v41 }
 0x23e   : > { %2614 = vmatpush1.bf16.msra.mxu0 %v3656_v38  ;;  %v3673_v38 = vld [vmem:[#allocation5 + $0xc] ss:$28 sps:$4 sm:$0xff]  }
 0x23f   : > { %2615 = vmatprep.subr.bf16.mxu0 %v3664_v32  ;;  %v3725_v32 = vld [vmem:[#allocation5 + $0x280] ss:$28 sps:$4 sm:$0xff]  }
 0x242   : > { %2616 = vmatpush1.bf16.msra.mxu0 %v3662_v33  ;;  %v3726_v33 = vld [vmem:[#allocation5 + $0xc0] ss:$28 sps:$4 sm:$0xff]  }
 0x243   : > { %2617 = vmatprep.subr.bf16.mxu0 %v3670_v36  ;;  %v3729_v36 = vld [vmem:[#allocation5 + $0x2f0] ss:$28 sps:$4 sm:$0xff]  }
 0x246   : > { %2618 = vmatpush1.bf16.msra.mxu0 %v3668_v37  ;;  %v3730_v37 = vld [vmem:[#allocation5 + $0x130] ss:$28 sps:$4 sm:$0xff]  }
 0x2e2   : > { %v1581_v46 = vpop.f32.mrb[0].mxu1 }
 0x2e3   : > { %v1582_v47 = vadd.f32 %v1581_v46, %v1380_v44  ;;  %v1583_v48 = vpop.f32.mrb[1].mxu1 }
 0x2e4   : > { %v1584_v49 = vadd.f32 %v1583_v48, %v1384_v45  ;;  %v1585_v50 = vpop.f32.mrb[2].mxu1 }
 0x2e5   : > { %2769 = vst [vmem:[%s457_s28] sm:$0xff] %v1582_v47  ;;  %v1586_v51 = vadd.f32 %v1585_v50, %v1380_v44  ;;  %v1587_v52 = vpop.f32.mrb[3].mxu1  ;;  %v1628_v44 = vrot.slane %v1619_v39, %v4245_v43  ;;  %v3732_v39 = vld [vmem:[#allocation5 + $0x168] ss:$28 sps:$4 sm:$0xff]  }
 0x2e6   : > { %v1592_v53 = vmul.f32 0.5, %v1584_v49  ;;  %2770 = vst [vmem:[%s457_s28 + $0x8] sm:$0xff] %v1584_v49  ;;  %v1588_v54 = vadd.f32 %v1587_v52, %v1384_v45 }
 0x2e7   : > { %2771 = vst [vmem:[%s457_s28 + $0x10] sm:$0xff] %v1586_v51 }
 0x2e8   : > { %v1594_v55 = vmul.f32 1.442695, %v1592_v53  ;;  %v1593_v56 = vmul.f32 0.5, %v1588_v54  ;;  %2772 = vst [vmem:[%s457_s28 + $0x18] sm:$0xff] %v1588_v54 }
 0x2ea   : > { %3735 = vpow2.f32 %v1594_v55  ;;  %v1596_v57 = vmul.f32 1.442695, %v1593_v56 }
 0x2ec   : > { %3737 = vpow2.f32 %v1596_v57 }
 0x2f4   : > { %v3736_v59 = vpop.eup %3735 }
 0x2f5   : > { %v1598_v61 = vmul.f32 %v3736_v59, %v1590_v58  ;;  %v3671_v59 = vld [vmem:[#allocation5 + $0x8] ss:$28 sps:$4 sm:$0xff]  }
 0x2f6   : > { %v3738_v62 = vpop.eup %3737 }
 0x2f7   : > { %v1599_v63 = vmul.f32 %v3738_v62, %v1591_v60  ;;  %v1600_v0 = vadd.f32 %v1598_v61, %v1582_v47  ;;  %v3676_v60 = vld [vmem:[#allocation5 + $0x44] ss:$28 sps:$4 sm:$0xff]   ;;  %v3679_v62 = vld [vmem:[#allocation5 + $0x7c] ss:$28 sps:$4 sm:$0xff]  }
 0x2f8   : > { %v3674_v61 = vld [vmem:[#allocation5 + $0x40] ss:$28 sps:$4 sm:$0xff]  }
 0x2f9   : > { %v1601_v1 = vadd.f32 %v1599_v63, %v1586_v51  ;;  %v3677_v63 = vld [vmem:[#allocation5 + $0x78] ss:$28 sps:$4 sm:$0xff]  }
 0x2fb   : > { %v1602_v3 = vpack.c.bf16 %v1601_v1, %v1600_v0  ;;  %v3682_v0 = vld [vmem:[#allocation5 + $0xb4] ss:$28 sps:$4 sm:$0xff]  }
 0x2fc   : > { %v3680_v1 = vld [vmem:[#allocation5 + $0xb0] ss:$28 sps:$4 sm:$0xff]  }
 0x2fd   : > { %1744 = vmatmul.mubr.bf16.vlgmr.msra.gmra.mrb[4].mxu1 %v1602_v3  ;;  %v3683_v3 = vld [vmem:[#allocation5 + $0xe8] ss:$28 sps:$4 sm:$0xff]  }
 0x2fe   : > { %2502 = vmatpush1.bf16.msra.mxu1 %v3575_v2  ;;  %v3685_v2 = vld [vmem:[#allocation5 + $0xec] ss:$28 sps:$4 sm:$0xff]  }
 0x2ff   : > { %2503 = vmatprep.subr.bf16.mxu1 %v3583_v4  ;;  %v3688_v4 = vld [vmem:[#allocation5 + $0x124] ss:$28 sps:$4 sm:$0xff]  }
 0x302   : > { %2504 = vmatpush1.bf16.msra.mxu1 %v3581_v5  ;;  %v3686_v5 = vld [vmem:[#allocation5 + $0x120] ss:$28 sps:$4 sm:$0xff]  }
 0x303   : > { %2505 = vmatprep.subr.bf16.mxu1 %v3589_v6  ;;  %v3691_v6 = vld [vmem:[#allocation5 + $0x15c] ss:$28 sps:$4 sm:$0xff]  }
 0x306   : > { %2506 = vmatpush1.bf16.msra.mxu1 %v3587_v7  ;;  %v3689_v7 = vld [vmem:[#allocation5 + $0x158] ss:$28 sps:$4 sm:$0xff]  }
 0x307   : > { %2507 = vmatprep.subr.bf16.mxu1 %v3595_v8  ;;  %v3694_v8 = vld [vmem:[#allocation5 + $0x194] ss:$28 sps:$4 sm:$0xff]  }
 0x30a   : > { %2508 = vmatpush1.bf16.msra.mxu1 %v3593_v9  ;;  %v3692_v9 = vld [vmem:[#allocation5 + $0x190] ss:$28 sps:$4 sm:$0xff]  }
 0x30b   : > { %2509 = vmatprep.subr.bf16.mxu1 %v3601_v10  ;;  %v3697_v10 = vld [vmem:[#allocation5 + $0x1cc] ss:$28 sps:$4 sm:$0xff]  }
 0x30e   : > { %2510 = vmatpush1.bf16.msra.mxu1 %v3599_v11  ;;  %v3695_v11 = vld [vmem:[#allocation5 + $0x1c8] ss:$28 sps:$4 sm:$0xff]  }
 0x30f   : > { %2511 = vmatprep.subr.bf16.mxu1 %v3607_v12  ;;  %v3700_v12 = vld [vmem:[#allocation5 + $0x204] ss:$28 sps:$4 sm:$0xff]  }
 0x312   : > { %2512 = vmatpush1.bf16.msra.mxu1 %v3605_v13  ;;  %v3698_v13 = vld [vmem:[#allocation5 + $0x200] ss:$28 sps:$4 sm:$0xff]  }
 0x313   : > { %2513 = vmatprep.subr.bf16.mxu1 %v3613_v14  ;;  %v3703_v14 = vld [vmem:[#allocation5 + $0x23c] ss:$28 sps:$4 sm:$0xff]  }
 0x316   : > { %2514 = vmatpush1.bf16.msra.mxu1 %v3611_v15  ;;  %v3701_v15 = vld [vmem:[#allocation5 + $0x238] ss:$28 sps:$4 sm:$0xff]  }
 0x317   : > { %2515 = vmatprep.subr.bf16.mxu1 %v3619_v16  ;;  %v3706_v16 = vld [vmem:[#allocation5 + $0x274] ss:$28 sps:$4 sm:$0xff]  }
 0x31a   : > { %2516 = vmatpush1.bf16.msra.mxu1 %v3617_v17  ;;  %v3704_v17 = vld [vmem:[#allocation5 + $0x270] ss:$28 sps:$4 sm:$0xff]  }
 0x31b   : > { %2517 = vmatprep.subr.bf16.mxu1 %v3625_v18  ;;  %v3709_v18 = vld [vmem:[#allocation5 + $0x2ac] ss:$28 sps:$4 sm:$0xff]  }
 0x31e   : > { %2518 = vmatpush1.bf16.msra.mxu1 %v3623_v19  ;;  %v3707_v19 = vld [vmem:[#allocation5 + $0x2a8] ss:$28 sps:$4 sm:$0xff]  }
 0x31f   : > { %2519 = vmatprep.subr.bf16.mxu1 %v3631_v20  ;;  %v3712_v20 = vld [vmem:[#allocation5 + $0x2e4] ss:$28 sps:$4 sm:$0xff]  }
 0x322   : > { %2520 = vmatpush1.bf16.msra.mxu1 %v3629_v21  ;;  %v3710_v21 = vld [vmem:[#allocation5 + $0x2e0] ss:$28 sps:$4 sm:$0xff]  }
 0x323   : > { %2521 = vmatprep.subr.bf16.mxu1 %v3637_v22  ;;  %v3715_v22 = vld [vmem:[#allocation5 + $0x31c] ss:$28 sps:$4 sm:$0xff]  }
 0x326   : > { %2522 = vmatpush1.bf16.msra.mxu1 %v3635_v23  ;;  %v3713_v23 = vld [vmem:[#allocation5 + $0x318] ss:$28 sps:$4 sm:$0xff]  }
 0x327   : > { %2523 = vmatprep.subr.bf16.mxu1 %v3643_v24  ;;  %v3718_v24 = vld [vmem:[#allocation5 + $0x354] ss:$28 sps:$4 sm:$0xff]  }
 0x32a   : > { %2524 = vmatpush1.bf16.msra.mxu1 %v3641_v25  ;;  %v3716_v25 = vld [vmem:[#allocation5 + $0x350] ss:$28 sps:$4 sm:$0xff]  }
 0x32b   : > { %2525 = vmatprep.subr.bf16.mxu1 %v3649_v26  ;;  %v3719_v26 = vld [vmem:[#allocation5 + $0x1d8] ss:$28 sps:$4 sm:$0xff]  }
 0x32e   : > { %2526 = vmatpush1.bf16.msra.mxu1 %v3647_v27  ;;  %v3720_v27 = vld [vmem:[#allocation5 + $0x18] ss:$28 sps:$4 sm:$0xff]  }
 0x32f   : > { %2527 = vmatprep.subr.bf16.mxu1 %v3655_v28  ;;  %v3721_v28 = vld [vmem:[#allocation5 + $0x210] ss:$28 sps:$4 sm:$0xff]  }
 0x332   : > { %2528 = vmatpush1.bf16.msra.mxu1 %v3653_v29  ;;  %v3722_v29 = vld [vmem:[#allocation5 + $0x50] ss:$28 sps:$4 sm:$0xff]  }
 0x333   : > { %2529 = vmatprep.subr.bf16.mxu1 %v3661_v30  ;;  %v3723_v30 = vld [vmem:[#allocation5 + $0x248] ss:$28 sps:$4 sm:$0xff]  }
 0x336   : > { %2530 = vmatpush1.bf16.msra.mxu1 %v3659_v31  ;;  %v3724_v31 = vld [vmem:[#allocation5 + $0x88] ss:$28 sps:$4 sm:$0xff]  }
 0x337   : > { %2531 = vmatprep.subr.bf16.mxu1 %v3667_v34  ;;  %v3727_v34 = vld [vmem:[#allocation5 + $0x2b8] ss:$28 sps:$4 sm:$0xff]  }
 0x33a   : > { %2532 = vmatpush1.bf16.msra.mxu1 %v3665_v35  ;;  %v3728_v35 = vld [vmem:[#allocation5 + $0xf8] ss:$28 sps:$4 sm:$0xff]  }
 0x33b   : > { %2544 = vmatprep.subr.bf16.mxu1 %v3673_v38  ;;  %v3731_v38 = vld [vmem:[#allocation5 + $0x328] ss:$28 sps:$4 sm:$0xff]  }
 0x3d0   : > { %v1745_v45 = vpop.f32.mrb[4].mxu1 }
 0x3d1   : > { %v1746_v46 = vadd.f32 %v1745_v45, %v1624_v42  ;;  %v1747_v47 = vpop.f32.mrb[5].mxu1  ;;  %v1908_v45 = vsub.s32 4, %v4236_v40 }
 0x3d2   : > { %v1748_v48 = vadd.f32 %v1747_v47, %v1628_v44  ;;  %v1749_v49 = vpop.f32.mrb[6].mxu1  ;;  %v1912_v47 = vsub.s32 5, %v4236_v40 }
 0x3d3   : > { %v1750_v50 = vadd.f32 %v1749_v49, %v1624_v42  ;;  %v1751_v51 = vpop.f32.mrb[7].mxu1  ;;  %v1754_v53 = vmax.f32 %v1746_v46, 0.0  ;;  %v3733_v42 = vld [vmem:[#allocation5 + $0x360] ss:$28 sps:$4 sm:$0xff]  }
 0x3d4   : > { %v1752_v52 = vadd.f32 %v1751_v51, %v1628_v44  ;;  %v1755_v55 = vmax.f32 %v1748_v48, 0.0  ;;  %v3734_v44 = vld [vmem:[#allocation5 + $0x1a0] ss:$28 sps:$4 sm:$0xff]  }
 0x3d5   : > { %v1756_v54 = vmax.f32 %v1750_v50, 0.0  ;;  %v4329_v46 = vld [vmem:[%s4424_s9] sm:$0xff] }
 0x3d6   : > { %v1757_v56 = vmax.f32 %v1752_v52, 0.0  ;;  %v1893_v48 = vrot.slane %v4329_v46, %v4239_v41  ;;  %v1909_v49 = vrot.slane %v4329_v46, %v1908_v45  ;;  %v1897_v50 = vrot.slane %v4329_v46, %v4245_v43 }
 0x3d7   : > { %v4313_v57 = vpack.c.bf16 %v1756_v54, %v1754_v53  ;;  %v1913_v51 = vrot.slane %v4329_v46, %v1912_v47 }
 0x3d8   : > { %v4315_v58 = vpack.c.bf16 %v1757_v56, %v1755_v55 }
 0x3da   : > { %2533 = vmatprep.mubr.bf16.mxu1 %v4315_v58  ;;  %2619 = vmatprep.mubr.bf16.mxu0 %v4315_v58 }
 0x3db   : > { %2534 = vmatmul.mubr.bf16.vlgmr.msra.gmra.mrb[8].mxu1 %v4313_v57  ;;  %2620 = vmatmul.mubr.bf16.vlgmr.msra.gmra.mrb[4].mxu0 %v4313_v57 }
 0x3dc   : > { %2545 = vmatpush1.bf16.msra.mxu1 %v3671_v59  ;;  %2576 = vmatprep.mubr.bf16.mxu1 %v4315_v58 }
 0x3dd   : > { %2546 = vmatprep.subr.bf16.mxu1 %v3676_v60 }
 0x3e0   : > { %2547 = vmatpush1.bf16.msra.mxu1 %v3674_v61 }
 0x3e1   : > { %2548 = vmatprep.subr.bf16.mxu1 %v3679_v62 }
 0x3e4   : > { %2549 = vmatpush1.bf16.msra.mxu1 %v3677_v63 }
 0x3e5   : > { %2550 = vmatprep.subr.bf16.mxu1 %v3682_v0 }
 0x3e8   : > { %2551 = vmatpush1.bf16.msra.mxu1 %v3680_v1 }
 0x3e9   : > { %2552 = vmatprep.subr.bf16.mxu1 %v3685_v2 }
 0x3ec   : > { %2553 = vmatpush1.bf16.msra.mxu1 %v3683_v3 }
 0x3ed   : > { %2554 = vmatprep.subr.bf16.mxu1 %v3688_v4 }
 0x3f0   : > { %2555 = vmatpush1.bf16.msra.mxu1 %v3686_v5 }
 0x3f1   : > { %2556 = vmatprep.subr.bf16.mxu1 %v3691_v6 }
 0x3f4   : > { %2557 = vmatpush1.bf16.msra.mxu1 %v3689_v7 }
 0x3f5   : > { %2558 = vmatprep.subr.bf16.mxu1 %v3694_v8 }
 0x3f8   : > { %2559 = vmatpush1.bf16.msra.mxu1 %v3692_v9 }
 0x3f9   : > { %2560 = vmatprep.subr.bf16.mxu1 %v3697_v10 }
 0x3fc   : > { %2561 = vmatpush1.bf16.msra.mxu1 %v3695_v11 }
 0x3fd   : > { %2562 = vmatprep.subr.bf16.mxu1 %v3700_v12 }
 0x400   : > { %2563 = vmatpush1.bf16.msra.mxu1 %v3698_v13 }
 0x401   : > { %2564 = vmatprep.subr.bf16.mxu1 %v3703_v14 }
 0x404   : > { %2565 = vmatpush1.bf16.msra.mxu1 %v3701_v15 }
 0x405   : > { %2566 = vmatprep.subr.bf16.mxu1 %v3706_v16 }
 0x408   : > { %2567 = vmatpush1.bf16.msra.mxu1 %v3704_v17 }
 0x409   : > { %2568 = vmatprep.subr.bf16.mxu1 %v3709_v18 }
 0x40c   : > { %2569 = vmatpush1.bf16.msra.mxu1 %v3707_v19 }
 0x40d   : > { %2570 = vmatprep.subr.bf16.mxu1 %v3712_v20 }
 0x410   : > { %2571 = vmatpush1.bf16.msra.mxu1 %v3710_v21 }
 0x411   : > { %2572 = vmatprep.subr.bf16.mxu1 %v3715_v22 }
 0x414   : > { %2573 = vmatpush1.bf16.msra.mxu1 %v3713_v23 }
 0x415   : > { %2574 = vmatprep.subr.bf16.mxu1 %v3718_v24 }
 0x418   : > { %2575 = vmatpush1.bf16.msra.mxu1 %v3716_v25 }
 0x419   : > { %3227 = vmatprep.subr.bf16.mxu1 %v3719_v26 }
 0x41b   : > { %2577 = vmatmul.mubr.bf16.vlgmr.msra.gmra.mrb[12].mxu1 %v4313_v57 }
 0x41c   : > { %3228 = vmatpush3.bf16.msra.mxu1 %v3720_v27  ;;  %2662 = vmatprep.mubr.bf16.mxu1 %v4315_v58 }
 0x41d   : > { %3229 = vmatprep.subr.bf16.mxu1 %v3721_v28 }
 0x420   : > { %3230 = vmatpush3.bf16.msra.mxu1 %v3722_v29 }
 0x421   : > { %3231 = vmatprep.subr.bf16.mxu1 %v3723_v30 }
 0x424   : > { %3232 = vmatpush3.bf16.msra.mxu1 %v3724_v31 }
 0x425   : > { %3233 = vmatprep.subr.bf16.mxu1 %v3725_v32 }
 0x428   : > { %3234 = vmatpush3.bf16.msra.mxu1 %v3726_v33 }
 0x429   : > { %3235 = vmatprep.subr.bf16.mxu1 %v3727_v34  ;;  %v1900_v34 = vsub.s32 2, %v4236_v40 }
 0x42c   : > { %3236 = vmatpush3.bf16.msra.mxu1 %v3728_v35  ;;  %v1904_v35 = vsub.s32 3, %v4236_v40 }
 0x42d   : > { %3237 = vmatprep.subr.bf16.mxu1 %v3729_v36  ;;  %v1901_v36 = vrot.slane %v4329_v46, %v1900_v34 }
 0x430   : > { %3238 = vmatpush3.bf16.msra.mxu1 %v3730_v37  ;;  %v1905_v37 = vrot.slane %v4329_v46, %v1904_v35 }
 0x431   : > { %3239 = vmatprep.subr.bf16.mxu1 %v3731_v38 }
 0x434   : > { %3240 = vmatpush3.bf16.msra.mxu1 %v3732_v39 }
 0x435   : > { %3241 = vmatprep.subr.bf16.mxu1 %v3733_v42 }
 0x438   : > { %3242 = vmatpush3.bf16.msra.mxu1 %v3734_v44 }
 0x43b   : > { %2663 = vmatmul.mubr.bf16.vlgmr.msra.gmra.mrb[16].mxu1 %v4313_v57 }
 0x4ae   : > { %v2535_v52 = vpop.f32.mrb[8].mxu1  ;;  %v2621_v53 = vpop.f32.mrb[4].mxu0 }
 0x4af   : > { %v2536_v54 = vadd.f32 %v2535_v52, %v1893_v48  ;;  %v2622_v55 = vadd.f32 %v2621_v53, %v1909_v49  ;;  %v2537_v56 = vpop.f32.mrb[9].mxu1  ;;  %v2623_v57 = vpop.f32.mrb[5].mxu0 }
 0x4b0   : > { %v2538_v58 = vadd.f32 %v2537_v56, %v1897_v50  ;;  %v2624_v59 = vadd.f32 %v2623_v57, %v1913_v51  ;;  %v2539_v60 = vpop.f32.mrb[10].mxu1  ;;  %v2625_v61 = vpop.f32.mrb[6].mxu0 }
 0x4b1   : > { %v3207_v62 = vmul.f32 -1.442695, %v2536_v54  ;;  %v3211_v63 = vmul.f32 -1.442695, %v2622_v55  ;;  %v2540_v41 = vadd.f32 %v2539_v60, %v1893_v48  ;;  %v2626_v0 = vadd.f32 %v2625_v61, %v1909_v49  ;;  %v2541_v1 = vpop.f32.mrb[11].mxu1  ;;  %v2627_v2 = vpop.f32.mrb[7].mxu0 }
 0x4b2   : > { %v3208_v3 = vmul.f32 -1.442695, %v2538_v58  ;;  %v3212_v43 = vmul.f32 -1.442695, %v2624_v59  ;;  %v2542_v4 = vadd.f32 %v2541_v1, %v1897_v50  ;;  %v2628_v5 = vadd.f32 %v2627_v2, %v1913_v51 }
 0x4b3   : > { %3739 = vpow2.f32 %v3207_v62  ;;  %v3214_v6 = vmul.f32 -1.442695, %v2540_v41  ;;  %v3218_v7 = vmul.f32 -1.442695, %v2626_v0 }
 0x4b4   : > { %3741 = vpow2.f32 %v3211_v63  ;;  %v3215_v8 = vmul.f32 -1.442695, %v2542_v4  ;;  %v3219_v9 = vmul.f32 -1.442695, %v2628_v5  ;;  %v1916_v63 = vsub.s32 6, %v4236_v40 }
 0x4b5   : > { %3743 = vpow2.f32 %v3208_v3 }
 0x4b6   : > { %3745 = vpow2.f32 %v3212_v43  ;;  %v1917_v3 = vrot.slane %v4329_v46, %v1916_v63 }
 0x4b7   : > { %3747 = vpow2.f32 %v3214_v6 }
 0x4b8   : > { %3749 = vpow2.f32 %v3218_v7 }
 0x4b9   : > { %3751 = vpow2.f32 %v3215_v8 }
 0x4ba   : > { %3753 = vpow2.f32 %v3219_v9 }
 0x4bd   : > { %v3740_v10 = vpop.eup %3739 }
 0x4be   : > { %v3742_v11 = vpop.eup %3741  ;;  %v2713_v12 = vadd.f32 1.0, %v3740_v10 }
 0x4bf   : > { %v3744_v13 = vpop.eup %3743  ;;  %v2717_v14 = vadd.f32 1.0, %v3742_v11 }
 0x4c0   : > { %v3746_v15 = vpop.eup %3745  ;;  %3755 = vrcp.f32 %v2713_v12  ;;  %v2714_v16 = vadd.f32 1.0, %v3744_v13 }
 0x4c1   : > { %v3748_v17 = vpop.eup %3747  ;;  %3757 = vrcp.f32 %v2717_v14  ;;  %v2718_v18 = vadd.f32 1.0, %v3746_v15 }
 0x4c2   : > { %v3750_v19 = vpop.eup %3749  ;;  %3759 = vrcp.f32 %v2714_v16  ;;  %v2720_v20 = vadd.f32 1.0, %v3748_v17 }
 0x4c3   : > { %v3752_v21 = vpop.eup %3751  ;;  %3761 = vrcp.f32 %v2718_v18  ;;  %v2724_v22 = vadd.f32 1.0, %v3750_v19 }
 0x4c4   : > { %v3754_v23 = vpop.eup %3753  ;;  %3763 = vrcp.f32 %v2720_v20  ;;  %v2721_v24 = vadd.f32 1.0, %v3752_v21 }
 0x4c5   : > { %3765 = vrcp.f32 %v2724_v22  ;;  %v2725_v25 = vadd.f32 1.0, %v3754_v23 }
 0x4c6   : > { %3767 = vrcp.f32 %v2721_v24 }
 0x4c7   : > { %3769 = vrcp.f32 %v2725_v25 }
 0x4ca   : > { %v3756_v26 = vpop.eup %3755 }
 0x4cb   : > { %v3758_v27 = vpop.eup %3757  ;;  %2755 = vst [vmem:[%s4341_s12] sm:$0xff] %v3756_v26 }
 0x4cc   : > { %v3760_v28 = vpop.eup %3759  ;;  %2759 = vst [vmem:[%s4341_s12 + $0x20] sm:$0xff] %v3758_v27 }
 0x4cd   : > { %v3762_v29 = vpop.eup %3761  ;;  %2756 = vst [vmem:[%s4341_s12 + $0x8] sm:$0xff] %v3760_v28 }
 0x4ce   : > { %v3764_v30 = vpop.eup %3763  ;;  %2760 = vst [vmem:[%s4341_s12 + $0x28] sm:$0xff] %v3762_v29 }
 0x4cf   : > { %v3766_v31 = vpop.eup %3765  ;;  %2762 = vst [vmem:[%s4341_s12 + $0x38] sm:$0xff] %v3764_v30 }
 0x4d0   : > { %v3768_v32 = vpop.eup %3767  ;;  %2766 = vst [vmem:[%s4341_s12 + $0x58] sm:$0xff] %v3766_v31 }
 0x4d1   : > { %v3770_v33 = vpop.eup %3769  ;;  %2763 = vst [vmem:[%s4341_s12 + $0x40] sm:$0xff] %v3768_v32 }
 0x4d2   : > { %2767 = vst [vmem:[%s4341_s12 + $0x60] sm:$0xff] %v3770_v33 }
 0x4ee   : > { %v2578_v38 = vpop.f32.mrb[12].mxu1 }
 0x4ef   : > { %v2579_v39 = vadd.f32 %v2578_v38, %v1901_v36  ;;  %v2580_v42 = vpop.f32.mrb[13].mxu1 }
 0x4f0   : > { %v2581_v44 = vadd.f32 %v2580_v42, %v1905_v37  ;;  %v2582_v45 = vpop.f32.mrb[14].mxu1 }
 0x4f1   : > { %v3209_v47 = vmul.f32 -1.442695, %v2579_v39  ;;  %v2583_v48 = vadd.f32 %v2582_v45, %v1901_v36  ;;  %v2584_v49 = vpop.f32.mrb[15].mxu1 }
 0x4f2   : > { %v3210_v50 = vmul.f32 -1.442695, %v2581_v44  ;;  %v2585_v51 = vadd.f32 %v2584_v49, %v1905_v37 }
 0x4f3   : > { %3771 = vpow2.f32 %v3209_v47  ;;  %v3216_v52 = vmul.f32 -1.442695, %v2583_v48 }
 0x4f4   : > { %3773 = vpow2.f32 %v3210_v50  ;;  %v3217_v53 = vmul.f32 -1.442695, %v2585_v51 }
 0x4f5   : > { %3775 = vpow2.f32 %v3216_v52 }
 0x4f6   : > { %3777 = vpow2.f32 %v3217_v53 }
 0x4fd   : > { %v3772_v54 = vpop.eup %3771 }
 0x4fe   : > { %v3774_v55 = vpop.eup %3773  ;;  %v2715_v56 = vadd.f32 1.0, %v3772_v54 }
 0x4ff   : > { %v3776_v57 = vpop.eup %3775  ;;  %v2716_v58 = vadd.f32 1.0, %v3774_v55 }
 0x500   : > { %v3778_v59 = vpop.eup %3777  ;;  %3779 = vrcp.f32 %v2715_v56  ;;  %v2722_v60 = vadd.f32 1.0, %v3776_v57 }
 0x501   : > { %3781 = vrcp.f32 %v2716_v58  ;;  %v2723_v61 = vadd.f32 1.0, %v3778_v59 }
 0x502   : > { %3783 = vrcp.f32 %v2722_v60 }
 0x503   : > { %3785 = vrcp.f32 %v2723_v61 }
 0x50a   : > { %v3780_v62 = vpop.eup %3779 }
 0x50b   : > { %v3782_v41 = vpop.eup %3781  ;;  %2757 = vst [vmem:[%s4341_s12 + $0x10] sm:$0xff] %v3780_v62 }
 0x50c   : > { %v3784_v0 = vpop.eup %3783  ;;  %2758 = vst [vmem:[%s4341_s12 + $0x18] sm:$0xff] %v3782_v41 }
 0x50d   : > { %v3786_v1 = vpop.eup %3785  ;;  %2764 = vst [vmem:[%s4341_s12 + $0x48] sm:$0xff] %v3784_v0 }
 0x50e   : > { %2765 = vst [vmem:[%s4341_s12 + $0x50] sm:$0xff] %v3786_v1  ;;  %v3243_v2 = vpop.f32.mrb[16].mxu1 }
 0x50f   : > { %v3244_v43 = vpop.f32.mrb[17].mxu1 }
 0x510   : > { %v3245_v4 = vadd.f32 %v3244_v43, %v3243_v2  ;;  %v3246_v5 = vpop.f32.mrb[18].mxu1 }
 0x511   : > { %v3247_v6 = vpop.f32.mrb[19].mxu1 }
 0x512   : > { %v2665_v7 = vadd.f32 %v3245_v4, %v1917_v3  ;;  %v3248_v8 = vadd.f32 %v3247_v6, %v3246_v5 }
 0x514   : > { %v3213_v9 = vmul.f32 -1.442695, %v2665_v7  ;;  %v2668_v40 = vadd.f32 %v3248_v8, %v1917_v3 }
 0x516   : > { %3787 = vpow2.f32 %v3213_v9  ;;  %v3220_v10 = vmul.f32 -1.442695, %v2668_v40 }
 0x518   : > { %3789 = vpow2.f32 %v3220_v10 }
 0x520   : > { %v3788_v11 = vpop.eup %3787 }
 0x521   : > { %v2719_v12 = vadd.f32 1.0, %v3788_v11 }
 0x522   : > { %v3790_v46 = vpop.eup %3789 }
 0x523   : > { %3791 = vrcp.f32 %v2719_v12  ;;  %v2726_v13 = vadd.f32 1.0, %v3790_v46 }
 0x525   : > { %3793 = vrcp.f32 %v2726_v13 }
 0x52d   : > { %v3792_v14 = vpop.eup %3791 }
 0x52e   : > { %2761 = vst [vmem:[%s4341_s12 + $0x30] sm:$0xff] %v3792_v14 }
 0x52f   : > { %v3794_v15 = vpop.eup %3793 }
 0x530   : > { %2768 = vst [vmem:[%s4341_s12 + $0x68] sm:$0xff] %v3794_v15 }
 0x531   : > { %3864 = shalt.err (!%p3861_p11)
}
 0x532   : > { %s3865_s26 = scalar_lea.hbm %s4366_s16, 1792  ;;  %s3869_s30 = scalar_lea.hbm %s4425_s10, 3584 }
 0x533   : > { %p3866_p13 = scmp.ne.s32.totalorder %s4366_s16, %s3865_s26  ;;  %p3870_p6 = scmp.lt.u32.totalorder %s4366_s16, %s4425_s10 }
 0x534   : > { %p3871_p9 = scmp.lt.u32.totalorder %s3869_s30, %s3865_s26  ;;  %p3873_p10 = scmp.lt.u32.totalorder %s3865_s26, %s4366_s16 }
 0x535   : > { %p3867_p0 = pnand %p3866_p13, %p4449_p1 }
 0x536   : > { %p3872_p12 = por %p3871_p9, %p3870_p6 }
 0x537   : > { %p3868_p5 = pneg %p3867_p0 }
 0x538   : > { %p3874_p2 = por %p3873_p10, %p3872_p12 }
 0x53a   : > { %p3875_p3 = pnand %p3874_p2, %p3868_p5 }
 0x53c   : > { %3878 = shalt.err (!%p3875_p3)
}
 0x53d   : > { %s3931_s17 = smov 896   ;;  %s3932_s19 = smov 56  }
 0x53e   : > { %3276 = dma.vmem_to_hbm [thread:$0]  (%p4449_p1), %s4368_s23, 1792, %s4366_s16, %s4374_s13, %s3931_s17, %s3931_s17, %s3932_s19  }
 0x53f PF: > { %s4450_s28 = sld [smem:[#allocation11_spill]]  ;;  %s4451_s15 = sld [smem:[#allocation15_spill]] }
 0x540   : > { %p3293_p4 = scmp.ge.s32.totalorder %s3921_s20, 2 }
 0x545   : > { %s2813_s21 = sand.u32 1, %s4450_s28   ;;  %p4452_p7 = scmp.ne.s32.totalorder %s4451_s15, 0 }
 0x546   : > { %s2814_s22 = scalar_lea.sflag [#allocation4], %s2813_s21 }
 0x547   : > { %p3286_p8 = pnand %p3293_p4, %p4452_p7 }
 0x549   : > { %3904 = dma.done.wait (!%p3286_p8), %s2814_s22, 1792  }
 0x54a   : > { %3906 = vsyncadd (!%p3286_p8), %s2814_s22, 4294965504  ;;  %s4453_s20 = sld [smem:[#allocation13_spill]]  ;;  %s4454_s29 = sld [smem:[#allocation12_spill]] }
 0x54b   : > { %s4455_s19 = sld [smem:[#allocation14_spill]]  ;;  %s4456_s17 = smov %s3913_s18 }
 0x550   : > { %p24_p11 = scmp.ge.s32.totalorder %s4453_s20, 4   ;;  %s4457_s18 = smov %s4454_s29 }
 0x552   :  { %26 = sbr.rel (!%p24_p11) target bundleno = 5 (0x5), region = 119 }
 0x559   :  { %2828 = vsyncpa [#allocation3], 1 }
 0x55a   :  { %2830 = vsyncpa [#allocation3 + $0x1], 1 }
 0x55b   :  { %2831 = vsyncpa [#allocation6], 1 }
 0x55c   :  { %2832 = vsyncpa [#allocation4], 1 }
 0x55d   :  { %2834 = vsyncpa [#allocation4 + $0x1], 1 }

</bundles_post_ra>
